<compile_context>
chip_gen: v7x
topology: tpu7x:2x2x1
jax: 0.10.0
libtpu: 0.0.40
codegen_flags: <defaults>
</compile_context>

<pallas_src>
import functools

import numpy as np
import jax
import jax.numpy as jnp
from jax.experimental import pallas as pl
from jax.experimental.pallas import tpu as pltpu


def _lepe_attn_kernel(q_ref, k_ref, vl_ref, mask_ref, tapw_ref, bias_ref, o_ref,
                      *, W_sp, scale):
    """One grid step == Wb CSWin windows, all heads.

    q_ref, k_ref : (Wb, nh, N_w, hd)  bf16 head-split window tokens
    vl_ref       : (Wb, N_w, C)       bf16 lane-dense window tokens (C = nh*hd)
    mask_ref     : (9, N_w, 1)        f32 per-tap in-window validity mask
    tapw_ref     : (9, 1, C)          f32 per-tap depthwise conv weights
    bias_ref     : (1, 1, C)          f32 depthwise conv bias
    o_ref        : (Wb, N_w, C)       lane-dense output block
    """
    Wb, nh, N_w, hd = q_ref.shape
    C = nh * hd
    G = Wb * nh

    # ---- LePE: 3x3 depthwise conv (zero padded) over each (H_sp, W_sp) window,
    # computed lane-dense (all C channels on the lane axis).  Output token
    # n = y*W_sp + x reads token n + dy*W_sp + dx for tap (dy, dx); taps that
    # fall outside the window are zeroed by the validity mask.
    v_dense = vl_ref[...].astype(jnp.float32)                     # (Wb, N_w, C)
    lepe = jnp.zeros((Wb, N_w, C), jnp.float32)
    for dy in (-1, 0, 1):
        for dx in (-1, 0, 1):
            tap = (dy + 1) * 3 + (dx + 1)
            shift = (-(dy * W_sp + dx)) % N_w
            shifted = v_dense if shift == 0 else pltpu.roll(v_dense, shift=shift, axis=1)
            mw_tap = mask_ref[tap] * tapw_ref[tap]                # (N_w,1)*(1,C) -> (N_w, C)
            lepe = lepe + shifted * mw_tap
    lepe = lepe + bias_ref[...]

    # ---- Attention: softmax(q*scale @ k^T) @ v, batched over (window, head) ----
    qs = (q_ref[...].astype(jnp.float32) * scale).astype(jnp.bfloat16)
    qb = qs.reshape(G, N_w, hd)
    kb = k_ref[...].reshape(G, N_w, hd)

    s = jnp.einsum('gqd,gkd->gqk', qb, kb,
                   preferred_element_type=jnp.float32)            # (G, N_w, N_w)
    s = s - jnp.max(s, axis=-1, keepdims=True)
    p = jnp.exp(s)
    # Softmax normalization deferred until after the PV matmul (runs on the
    # small (.., N_w, hd) tensor instead of the (.., N_w, N_w) one).
    inv = pl.reciprocal(jnp.sum(p, axis=-1, keepdims=True), approx=True)
    inv = inv.reshape(Wb, nh, N_w, 1)
    p_bf = p.astype(jnp.bfloat16).reshape(Wb, nh, N_w, N_w)
    # TODO(synk): attn_drop is nn.Dropout(p=0.0) -> identity; no-op here.
    # TODO(synk): for stage-1 CSWin sizes (N_w ~ 392) the (G, N_w, N_w) block
    # should be streamed flash-style over the key axis instead of materialized.

    # Per-head PV matmul; each head's slab is written straight into its lane
    # offset of the lane-dense output block.
    for h in range(nh):                                           # static unroll
        v_h = vl_ref[:, :, h * hd:(h + 1) * hd]                   # (Wb, N_w, hd) bf16
        pv_h = jnp.einsum('bqk,bkd->bqd', p_bf[:, h], v_h,
                          preferred_element_type=jnp.float32)     # (Wb, N_w, hd) f32
        o_ref[:, :, h * hd:(h + 1) * hd] = (pv_h * inv[:, h]).astype(o_ref.dtype)

    # Add the lane-dense LePE term with a single dense read-modify-write; the
    # HBM write-back of the whole (Wb, N_w, C) tile happens after the body.
    o_ref[...] = o_ref[...] + lepe.astype(o_ref.dtype)


def _tpu_vmem_capacity_bytes(default_bytes=64 * 1024 * 1024):
    """Physical VMEM size (v5e/v6e: 128 MiB, v7x: 64 MiB), with a v7x-safe fallback."""
    try:
        info = pltpu.get_tpu_info()
        cap = int(getattr(info, "vmem_capacity_bytes", 0) or 0)
        if cap > 0:
            return cap
    except Exception:
        pass
    return default_bytes


def _per_window_vmem_bytes(num_heads, N_w, head_dim):
    """Conservative per-window VMEM estimate matching the kernel's live data."""
    C = num_heads * head_dim
    io = 2 * (3 * N_w * C * 2 + N_w * C * 4)           # q,k,v bf16 + f32 out, double-buffered
    scores = num_heads * N_w * N_w * (3 * 4 + 2)       # s/p/temp f32 + bf16 copy of p
    dense_tmp = 6 * N_w * C * 4                        # v_f32, rolled, lepe, pv slabs, slack
    return io + scores + dense_tmp


def _pick_window_block(n_win, per_win_bytes, budget_bytes, max_wb=256):
    """Largest window-batch Wb dividing n_win that fits the VMEM budget.

    Prefers an even grid-step count so both TensorCores of a 2-TC chip (v7x)
    get equal work; harmless on single-TC chips.
    """
    cap = max(1, min(max_wb, budget_bytes // max(per_win_bytes, 1), n_win))
    divisors = [d for d in range(1, n_win + 1) if n_win % d == 0 and d <= cap]
    even_steps = [d for d in divisors if (n_win // d) % 2 == 0]
    pool = even_steps if even_steps else divisors
    return max(pool)


def lepe_attention(qkv, conv_w, conv_b, *, resolution, idx, split_size, num_heads):
    """qkv: (3, B, L, C); conv_w: (C, 3, 3) depthwise weights; conv_b: (C,)."""
    q, k, v = qkv[0], qkv[1], qkv[2]
    B, L, C = q.shape
    H = W = resolution
    assert L == H * W, "flatten img_tokens has wrong size"

    if idx == -1:
        H_sp, W_sp = resolution, resolution
    elif idx == 0:
        H_sp, W_sp = resolution, split_size
    elif idx == 1:
        H_sp, W_sp = split_size, resolution
    else:
        raise ValueError("ERROR MODE")

    head_dim = C // num_heads
    scale = head_dim ** (-0.5)
    N_w = H_sp * W_sp
    nWh, nWw = H // H_sp, W // W_sp
    n_win = B * nWh * nWw

    # One fused permute per tensor: img2windows ordering + head split + bf16
    # cast (q, k).  v stays lane-dense (channels last) for the in-kernel LePE
    # conv and the per-head PV lane slices.
    def to_win_heads(x):
        x = x.reshape(B, nWh, H_sp, nWw, W_sp, num_heads, head_dim)
        x = x.transpose(0, 1, 3, 5, 2, 4, 6)          # (B, nWh, nWw, nh, H_sp, W_sp, hd)
        return x.reshape(n_win, num_heads, N_w, head_dim).astype(jnp.bfloat16)

    def to_win_dense(x):
        x = x.reshape(B, nWh, H_sp, nWw, W_sp, C)
        x = x.transpose(0, 1, 3, 2, 4, 5)             # (B, nWh, nWw, H_sp, W_sp, C)
        return x.reshape(n_win, N_w, C).astype(jnp.bfloat16)

    qh, kh = to_win_heads(q), to_win_heads(k)
    vl = to_win_dense(v)

    # Per-tap in-window validity mask (9, N_w, 1) and depthwise-conv tap weights
    # (9, 1, C); their outer product is formed in-kernel (9 tiny vmuls), so no
    # (9, N_w, C) block has to live in VMEM or be DMA'd.
    n_idx = np.arange(N_w)
    row, col = n_idx // W_sp, n_idx % W_sp
    mask_np = np.zeros((9, N_w, 1), np.float32)
    for dy in (-1, 0, 1):
        for dx in (-1, 0, 1):
            tap = (dy + 1) * 3 + (dx + 1)
            mask_np[tap, :, 0] = ((row + dy >= 0) & (row + dy < H_sp) &
                                  (col + dx >= 0) & (col + dx < W_sp))
    mask = jnp.asarray(mask_np)
    tapw = jnp.asarray(conv_w, jnp.float32).reshape(C, 9).T.reshape(9, 1, C)
    bias = jnp.asarray(conv_b, jnp.float32).reshape(1, 1, C)

    vmem_cap = _tpu_vmem_capacity_bytes()
    budget = int(vmem_cap * 0.45)                     # ~29 MiB on v7x, ~58 MiB on v5e/v6e
    vmem_limit = int(vmem_cap * 0.75)                 # ~48 MiB on v7x, ~96 MiB on v5e/v6e
    Wb = _pick_window_block(
        n_win, _per_window_vmem_bytes(num_heads, N_w, head_dim), budget)
    grid = (n_win // Wb,)

    kern = functools.partial(_lepe_attn_kernel, W_sp=W_sp, scale=scale)

    out_w = pl.pallas_call(
        kern,
        out_shape=jax.ShapeDtypeStruct((n_win, N_w, C), q.dtype),
        grid=grid,
        in_specs=[
            pl.BlockSpec((Wb, num_heads, N_w, head_dim), lambda i: (i, 0, 0, 0)),
            pl.BlockSpec((Wb, num_heads, N_w, head_dim), lambda i: (i, 0, 0, 0)),
            pl.BlockSpec((Wb, N_w, C), lambda i: (i, 0, 0)),
            pl.BlockSpec((9, N_w, 1), lambda i: (0, 0, 0)),
            pl.BlockSpec((9, 1, C), lambda i: (0, 0, 0)),
            pl.BlockSpec((1, 1, C), lambda i: (0, 0, 0)),
        ],
        out_specs=pl.BlockSpec((Wb, N_w, C), lambda i: (i, 0, 0)),
        compiler_params=pltpu.CompilerParams(
            dimension_semantics=("parallel",),
            vmem_limit_bytes=vmem_limit),
    )(qh, kh, vl, mask, tapw, bias)

    # windows2img (layout glue only; identity reshape for idx == -1 / idx == 1,
    # a single permute for idx == 0 -- fused by XLA under jit).
    x = out_w.reshape(B, nWh, nWw, H_sp, W_sp, C)
    x = x.transpose(0, 1, 3, 2, 4, 5).reshape(B, H * W, C)
    return x


def lepe_attention_ref(qkv, conv_w, conv_b, *, resolution, idx, split_size, num_heads):
    """Pure-JAX reference mirroring the PyTorch forward."""
    q, k, v = qkv[0], qkv[1], qkv[2]
    B, L, C = q.shape
    H = W = resolution
    if idx == -1:
        H_sp, W_sp = resolution, resolution
    elif idx == 0:
        H_sp, W_sp = resolution, split_size
    else:
        H_sp, W_sp = split_size, resolution
    hd = C // num_heads
    scale = hd ** (-0.5)
    N_w = H_sp * W_sp
    nWh, nWw = H // H_sp, W // W_sp

    def to_w(x):
        x = x.reshape(B, nWh, H_sp, nWw, W_sp, C).transpose(0, 1, 3, 2, 4, 5)
        return x.reshape(-1, N_w, C)

    qw, kw, vw = to_w(q), to_w(k), to_w(v)
    Bp = qw.shape[0]

    def heads(x):
        return x.reshape(Bp, N_w, num_heads, hd).transpose(0, 2, 1, 3)

    qh, kh, vh = heads(qw) * scale, heads(kw), heads(vw)
    attn = jnp.einsum('bhqd,bhkd->bhqk', qh, kh)
    attn = jax.nn.softmax(attn, axis=-1)
    out = jnp.einsum('bhqk,bhkd->bhqd', attn, vh)

    vimg = vw.reshape(Bp, H_sp, W_sp, C)
    vpad = jnp.pad(vimg, ((0, 0), (1, 1), (1, 1), (0, 0)))
    lepe = jnp.zeros_like(vimg) + conv_b
    for ky in range(3):
        for kx in range(3):
            lepe = lepe + vpad[:, ky:ky + H_sp, kx:kx + W_sp, :] * conv_w[:, ky, kx]
    lepe = lepe.reshape(Bp, N_w, num_heads, hd).transpose(0, 2, 1, 3)

    out = (out + lepe).transpose(0, 2, 1, 3).reshape(Bp, N_w, C)
    x = out.reshape(B, nWh, nWw, H_sp, W_sp, C).transpose(0, 1, 3, 2, 4, 5)
    return x.reshape(B, H * W, C)


if __name__ == "__main__":
    # Small shapes consistent with the module: dim=32, num_heads=4, resolution=8,
    # split_size=4, idx=0 -> windows of 8x4.
    B, resolution, C = 2, 8, 32
    num_heads, split_size, idx = 4, 4, 0
    L = resolution * resolution

    key = jax.random.PRNGKey(0)
    k1, k2, k3 = jax.random.split(key, 3)
    qkv = jax.random.normal(k1, (3, B, L, C), dtype=jnp.float32)
    # Deterministic synthetic depthwise-conv parameters (nn.Conv2d(C, C, 3, groups=C)).
    conv_w = 0.1 * jax.random.normal(k2, (C, 3, 3), dtype=jnp.float32)
    conv_b = 0.1 * jax.random.normal(k3, (C,), dtype=jnp.float32)

    fn = jax.jit(functools.partial(
        lepe_attention, resolution=resolution, idx=idx,
        split_size=split_size, num_heads=num_heads))
    out = jax.block_until_ready(fn(qkv, conv_w, conv_b))

    ref = lepe_attention_ref(qkv, conv_w, conv_b, resolution=resolution, idx=idx,
                             split_size=split_size, num_heads=num_heads)
    assert out.shape == (B, L, C)
    err = float(jnp.max(jnp.abs(out - ref)))
    assert jnp.allclose(out, ref, atol=2e-2, rtol=2e-2), err

    print("KERNEL_OK")
</pallas_src>

<mosaic_0001>
module attributes {stable_mosaic.version = 11 : i64} {
  func.func @_lepe_attn_kernel(%arg0: i32, %arg1: memref<2x4x32x8xbf16, #tpu.memory_space<vmem>>, %arg2: memref<2x4x32x8xbf16, #tpu.memory_space<vmem>>, %arg3: memref<2x32x32xbf16, #tpu.memory_space<vmem>>, %arg4: memref<9x32x1xf32, #tpu.memory_space<vmem>>, %arg5: memref<9x1x32xf32, #tpu.memory_space<vmem>>, %arg6: memref<1x1x32xf32, #tpu.memory_space<vmem>>, %arg7: memref<2x32x32xf32, #tpu.memory_space<vmem>>) attributes {dimension_semantics = [#tpu.dimension_semantics<parallel>], iteration_bounds = array<i64: 2>, scalar_prefetch = 0 : i64, scratch_operands = 0 : i64, tpu.core_type = #tpu.core_type<tc>, window_params = [{transform_indices = @transform_0, window_bounds = array<i64: 2, 4, 32, 8>}, {transform_indices = @transform_1, window_bounds = array<i64: 2, 4, 32, 8>}, {transform_indices = @transform_2, window_bounds = array<i64: 2, 32, 32>}, {pipeline_mode = #tpu.pipeline_mode<synchronous>, transform_indices = @transform_3, window_bounds = array<i64: 9, 32, 1>}, {pipeline_mode = #tpu.pipeline_mode<synchronous>, transform_indices = @transform_4, window_bounds = array<i64: 9, 1, 32>}, {pipeline_mode = #tpu.pipeline_mode<synchronous>, transform_indices = @transform_5, window_bounds = array<i64: 1, 1, 32>}, {transform_indices = @transform_6, window_bounds = array<i64: 2, 32, 32>}]} {
    %c0 = arith.constant 0 : index
    %c0_0 = arith.constant 0 : index
    %c0_1 = arith.constant 0 : index
    %0 = vector.load %arg3[%c0, %c0_0, %c0_1] : memref<2x32x32xbf16, #tpu.memory_space<vmem>>, vector<2x32x32xbf16>
    %1 = arith.extf %0 : vector<2x32x32xbf16> to vector<2x32x32xf32>
    %cst = arith.constant 0.000000e+00 : f32
    %2 = vector.broadcast %cst : f32 to vector<2x32x32xf32>
    %c5_i32 = arith.constant 5 : i32
    %3 = tpu.dynamic_rotate %1 by %c5_i32 dim 1 : vector<2x32x32xf32>, i32 -> vector<2x32x32xf32>
    %c0_2 = arith.constant 0 : index
    %c0_3 = arith.constant 0 : index
    %c0_4 = arith.constant 0 : index
    %4 = vector.load %arg4[%c0_2, %c0_3, %c0_4] : memref<9x32x1xf32, #tpu.memory_space<vmem>>, vector<1x32x1xf32>
    %5 = vector.shape_cast %4 : vector<1x32x1xf32> to vector<32x1xf32>
    %c0_5 = arith.constant 0 : index
    %c0_6 = arith.constant 0 : index
    %c0_7 = arith.constant 0 : index
    %6 = vector.load %arg5[%c0_5, %c0_6, %c0_7] : memref<9x1x32xf32, #tpu.memory_space<vmem>>, vector<1x1x32xf32>
    %7 = vector.shape_cast %6 : vector<1x1x32xf32> to vector<1x32xf32>
    %8 = vector.broadcast %5 : vector<32x1xf32> to vector<32x32xf32>
    %9 = vector.broadcast %7 : vector<1x32xf32> to vector<32x32xf32>
    %10 = arith.mulf %8, %9 : vector<32x32xf32>
    %11 = vector.shape_cast %10 : vector<32x32xf32> to vector<1x32x32xf32>
    %12 = vector.broadcast %11 : vector<1x32x32xf32> to vector<2x32x32xf32>
    %13 = arith.mulf %3, %12 : vector<2x32x32xf32>
    %14 = arith.addf %2, %13 : vector<2x32x32xf32>
    %c4_i32 = arith.constant 4 : i32
    %15 = tpu.dynamic_rotate %1 by %c4_i32 dim 1 : vector<2x32x32xf32>, i32 -> vector<2x32x32xf32>
    %c1 = arith.constant 1 : index
    %c0_8 = arith.constant 0 : index
    %c0_9 = arith.constant 0 : index
    %16 = vector.load %arg4[%c1, %c0_8, %c0_9] : memref<9x32x1xf32, #tpu.memory_space<vmem>>, vector<1x32x1xf32>
    %17 = vector.shape_cast %16 : vector<1x32x1xf32> to vector<32x1xf32>
    %c1_10 = arith.constant 1 : index
    %c0_11 = arith.constant 0 : index
    %c0_12 = arith.constant 0 : index
    %18 = vector.load %arg5[%c1_10, %c0_11, %c0_12] : memref<9x1x32xf32, #tpu.memory_space<vmem>>, vector<1x1x32xf32>
    %19 = vector.shape_cast %18 : vector<1x1x32xf32> to vector<1x32xf32>
    %20 = vector.broadcast %17 : vector<32x1xf32> to vector<32x32xf32>
    %21 = vector.broadcast %19 : vector<1x32xf32> to vector<32x32xf32>
    %22 = arith.mulf %20, %21 : vector<32x32xf32>
    %23 = vector.shape_cast %22 : vector<32x32xf32> to vector<1x32x32xf32>
    %24 = vector.broadcast %23 : vector<1x32x32xf32> to vector<2x32x32xf32>
    %25 = arith.mulf %15, %24 : vector<2x32x32xf32>
    %26 = arith.addf %14, %25 : vector<2x32x32xf32>
    %c3_i32 = arith.constant 3 : i32
    %27 = tpu.dynamic_rotate %1 by %c3_i32 dim 1 : vector<2x32x32xf32>, i32 -> vector<2x32x32xf32>
    %c2 = arith.constant 2 : index
    %c0_13 = arith.constant 0 : index
    %c0_14 = arith.constant 0 : index
    %28 = vector.load %arg4[%c2, %c0_13, %c0_14] : memref<9x32x1xf32, #tpu.memory_space<vmem>>, vector<1x32x1xf32>
    %29 = vector.shape_cast %28 : vector<1x32x1xf32> to vector<32x1xf32>
    %c2_15 = arith.constant 2 : index
    %c0_16 = arith.constant 0 : index
    %c0_17 = arith.constant 0 : index
    %30 = vector.load %arg5[%c2_15, %c0_16, %c0_17] : memref<9x1x32xf32, #tpu.memory_space<vmem>>, vector<1x1x32xf32>
    %31 = vector.shape_cast %30 : vector<1x1x32xf32> to vector<1x32xf32>
    %32 = vector.broadcast %29 : vector<32x1xf32> to vector<32x32xf32>
    %33 = vector.broadcast %31 : vector<1x32xf32> to vector<32x32xf32>
    %34 = arith.mulf %32, %33 : vector<32x32xf32>
    %35 = vector.shape_cast %34 : vector<32x32xf32> to vector<1x32x32xf32>
    %36 = vector.broadcast %35 : vector<1x32x32xf32> to vector<2x32x32xf32>
    %37 = arith.mulf %27, %36 : vector<2x32x32xf32>
    %38 = arith.addf %26, %37 : vector<2x32x32xf32>
    %c1_i32 = arith.constant 1 : i32
    %39 = tpu.dynamic_rotate %1 by %c1_i32 dim 1 : vector<2x32x32xf32>, i32 -> vector<2x32x32xf32>
    %c3 = arith.constant 3 : index
    %c0_18 = arith.constant 0 : index
    %c0_19 = arith.constant 0 : index
    %40 = vector.load %arg4[%c3, %c0_18, %c0_19] : memref<9x32x1xf32, #tpu.memory_space<vmem>>, vector<1x32x1xf32>
    %41 = vector.shape_cast %40 : vector<1x32x1xf32> to vector<32x1xf32>
    %c3_20 = arith.constant 3 : index
    %c0_21 = arith.constant 0 : index
    %c0_22 = arith.constant 0 : index
    %42 = vector.load %arg5[%c3_20, %c0_21, %c0_22] : memref<9x1x32xf32, #tpu.memory_space<vmem>>, vector<1x1x32xf32>
    %43 = vector.shape_cast %42 : vector<1x1x32xf32> to vector<1x32xf32>
    %44 = vector.broadcast %41 : vector<32x1xf32> to vector<32x32xf32>
    %45 = vector.broadcast %43 : vector<1x32xf32> to vector<32x32xf32>
    %46 = arith.mulf %44, %45 : vector<32x32xf32>
    %47 = vector.shape_cast %46 : vector<32x32xf32> to vector<1x32x32xf32>
    %48 = vector.broadcast %47 : vector<1x32x32xf32> to vector<2x32x32xf32>
    %49 = arith.mulf %39, %48 : vector<2x32x32xf32>
    %50 = arith.addf %38, %49 : vector<2x32x32xf32>
    %c4 = arith.constant 4 : index
    %c0_23 = arith.constant 0 : index
    %c0_24 = arith.constant 0 : index
    %51 = vector.load %arg4[%c4, %c0_23, %c0_24] : memref<9x32x1xf32, #tpu.memory_space<vmem>>, vector<1x32x1xf32>
    %52 = vector.shape_cast %51 : vector<1x32x1xf32> to vector<32x1xf32>
    %c4_25 = arith.constant 4 : index
    %c0_26 = arith.constant 0 : index
    %c0_27 = arith.constant 0 : index
    %53 = vector.load %arg5[%c4_25, %c0_26, %c0_27] : memref<9x1x32xf32, #tpu.memory_space<vmem>>, vector<1x1x32xf32>
    %54 = vector.shape_cast %53 : vector<1x1x32xf32> to vector<1x32xf32>
    %55 = vector.broadcast %52 : vector<32x1xf32> to vector<32x32xf32>
    %56 = vector.broadcast %54 : vector<1x32xf32> to vector<32x32xf32>
    %57 = arith.mulf %55, %56 : vector<32x32xf32>
    %58 = vector.shape_cast %57 : vector<32x32xf32> to vector<1x32x32xf32>
    %59 = vector.broadcast %58 : vector<1x32x32xf32> to vector<2x32x32xf32>
    %60 = arith.mulf %1, %59 : vector<2x32x32xf32>
    %61 = arith.addf %50, %60 : vector<2x32x32xf32>
    %c31_i32 = arith.constant 31 : i32
    %62 = tpu.dynamic_rotate %1 by %c31_i32 dim 1 : vector<2x32x32xf32>, i32 -> vector<2x32x32xf32>
    %c5 = arith.constant 5 : index
    %c0_28 = arith.constant 0 : index
    %c0_29 = arith.constant 0 : index
    %63 = vector.load %arg4[%c5, %c0_28, %c0_29] : memref<9x32x1xf32, #tpu.memory_space<vmem>>, vector<1x32x1xf32>
    %64 = vector.shape_cast %63 : vector<1x32x1xf32> to vector<32x1xf32>
    %c5_30 = arith.constant 5 : index
    %c0_31 = arith.constant 0 : index
    %c0_32 = arith.constant 0 : index
    %65 = vector.load %arg5[%c5_30, %c0_31, %c0_32] : memref<9x1x32xf32, #tpu.memory_space<vmem>>, vector<1x1x32xf32>
    %66 = vector.shape_cast %65 : vector<1x1x32xf32> to vector<1x32xf32>
    %67 = vector.broadcast %64 : vector<32x1xf32> to vector<32x32xf32>
    %68 = vector.broadcast %66 : vector<1x32xf32> to vector<32x32xf32>
    %69 = arith.mulf %67, %68 : vector<32x32xf32>
    %70 = vector.shape_cast %69 : vector<32x32xf32> to vector<1x32x32xf32>
    %71 = vector.broadcast %70 : vector<1x32x32xf32> to vector<2x32x32xf32>
    %72 = arith.mulf %62, %71 : vector<2x32x32xf32>
    %73 = arith.addf %61, %72 : vector<2x32x32xf32>
    %c29_i32 = arith.constant 29 : i32
    %74 = tpu.dynamic_rotate %1 by %c29_i32 dim 1 : vector<2x32x32xf32>, i32 -> vector<2x32x32xf32>
    %c6 = arith.constant 6 : index
    %c0_33 = arith.constant 0 : index
    %c0_34 = arith.constant 0 : index
    %75 = vector.load %arg4[%c6, %c0_33, %c0_34] : memref<9x32x1xf32, #tpu.memory_space<vmem>>, vector<1x32x1xf32>
    %76 = vector.shape_cast %75 : vector<1x32x1xf32> to vector<32x1xf32>
    %c6_35 = arith.constant 6 : index
    %c0_36 = arith.constant 0 : index
    %c0_37 = arith.constant 0 : index
    %77 = vector.load %arg5[%c6_35, %c0_36, %c0_37] : memref<9x1x32xf32, #tpu.memory_space<vmem>>, vector<1x1x32xf32>
    %78 = vector.shape_cast %77 : vector<1x1x32xf32> to vector<1x32xf32>
    %79 = vector.broadcast %76 : vector<32x1xf32> to vector<32x32xf32>
    %80 = vector.broadcast %78 : vector<1x32xf32> to vector<32x32xf32>
    %81 = arith.mulf %79, %80 : vector<32x32xf32>
    %82 = vector.shape_cast %81 : vector<32x32xf32> to vector<1x32x32xf32>
    %83 = vector.broadcast %82 : vector<1x32x32xf32> to vector<2x32x32xf32>
    %84 = arith.mulf %74, %83 : vector<2x32x32xf32>
    %85 = arith.addf %73, %84 : vector<2x32x32xf32>
    %c28_i32 = arith.constant 28 : i32
    %86 = tpu.dynamic_rotate %1 by %c28_i32 dim 1 : vector<2x32x32xf32>, i32 -> vector<2x32x32xf32>
    %c7 = arith.constant 7 : index
    %c0_38 = arith.constant 0 : index
    %c0_39 = arith.constant 0 : index
    %87 = vector.load %arg4[%c7, %c0_38, %c0_39] : memref<9x32x1xf32, #tpu.memory_space<vmem>>, vector<1x32x1xf32>
    %88 = vector.shape_cast %87 : vector<1x32x1xf32> to vector<32x1xf32>
    %c7_40 = arith.constant 7 : index
    %c0_41 = arith.constant 0 : index
    %c0_42 = arith.constant 0 : index
    %89 = vector.load %arg5[%c7_40, %c0_41, %c0_42] : memref<9x1x32xf32, #tpu.memory_space<vmem>>, vector<1x1x32xf32>
    %90 = vector.shape_cast %89 : vector<1x1x32xf32> to vector<1x32xf32>
    %91 = vector.broadcast %88 : vector<32x1xf32> to vector<32x32xf32>
    %92 = vector.broadcast %90 : vector<1x32xf32> to vector<32x32xf32>
    %93 = arith.mulf %91, %92 : vector<32x32xf32>
    %94 = vector.shape_cast %93 : vector<32x32xf32> to vector<1x32x32xf32>
    %95 = vector.broadcast %94 : vector<1x32x32xf32> to vector<2x32x32xf32>
    %96 = arith.mulf %86, %95 : vector<2x32x32xf32>
    %97 = arith.addf %85, %96 : vector<2x32x32xf32>
    %c27_i32 = arith.constant 27 : i32
    %98 = tpu.dynamic_rotate %1 by %c27_i32 dim 1 : vector<2x32x32xf32>, i32 -> vector<2x32x32xf32>
    %c8 = arith.constant 8 : index
    %c0_43 = arith.constant 0 : index
    %c0_44 = arith.constant 0 : index
    %99 = vector.load %arg4[%c8, %c0_43, %c0_44] : memref<9x32x1xf32, #tpu.memory_space<vmem>>, vector<1x32x1xf32>
    %100 = vector.shape_cast %99 : vector<1x32x1xf32> to vector<32x1xf32>
    %c8_45 = arith.constant 8 : index
    %c0_46 = arith.constant 0 : index
    %c0_47 = arith.constant 0 : index
    %101 = vector.load %arg5[%c8_45, %c0_46, %c0_47] : memref<9x1x32xf32, #tpu.memory_space<vmem>>, vector<1x1x32xf32>
    %102 = vector.shape_cast %101 : vector<1x1x32xf32> to vector<1x32xf32>
    %103 = vector.broadcast %100 : vector<32x1xf32> to vector<32x32xf32>
    %104 = vector.broadcast %102 : vector<1x32xf32> to vector<32x32xf32>
    %105 = arith.mulf %103, %104 : vector<32x32xf32>
    %106 = vector.shape_cast %105 : vector<32x32xf32> to vector<1x32x32xf32>
    %107 = vector.broadcast %106 : vector<1x32x32xf32> to vector<2x32x32xf32>
    %108 = arith.mulf %98, %107 : vector<2x32x32xf32>
    %109 = arith.addf %97, %108 : vector<2x32x32xf32>
    %c0_48 = arith.constant 0 : index
    %c0_49 = arith.constant 0 : index
    %c0_50 = arith.constant 0 : index
    %110 = vector.load %arg6[%c0_48, %c0_49, %c0_50] : memref<1x1x32xf32, #tpu.memory_space<vmem>>, vector<1x1x32xf32>
    %111 = vector.broadcast %110 : vector<1x1x32xf32> to vector<2x32x32xf32>
    %112 = arith.addf %109, %111 : vector<2x32x32xf32>
    %c0_51 = arith.constant 0 : index
    %c0_52 = arith.constant 0 : index
    %c0_53 = arith.constant 0 : index
    %c0_54 = arith.constant 0 : index
    %113 = vector.load %arg1[%c0_51, %c0_52, %c0_53, %c0_54] : memref<2x4x32x8xbf16, #tpu.memory_space<vmem>>, vector<2x4x32x8xbf16>
    %114 = arith.extf %113 : vector<2x4x32x8xbf16> to vector<2x4x32x8xf32>
    %cst_55 = arith.constant 0.353553385 : f32
    %115 = vector.broadcast %cst_55 : f32 to vector<2x4x32x8xf32>
    %116 = arith.mulf %114, %115 : vector<2x4x32x8xf32>
    %117 = arith.truncf %116 : vector<2x4x32x8xf32> to vector<2x4x32x8xbf16>
    %118 = vector.shape_cast %117 : vector<2x4x32x8xbf16> to vector<8x32x8xbf16>
    %c0_56 = arith.constant 0 : index
    %c0_57 = arith.constant 0 : index
    %c0_58 = arith.constant 0 : index
    %c0_59 = arith.constant 0 : index
    %119 = vector.load %arg2[%c0_56, %c0_57, %c0_58, %c0_59] : memref<2x4x32x8xbf16, #tpu.memory_space<vmem>>, vector<2x4x32x8xbf16>
    %120 = vector.shape_cast %119 : vector<2x4x32x8xbf16> to vector<8x32x8xbf16>
    "tpu.trace_start"() <{level = 10 : i32, message = "gqd,gkd->gqk"}> : () -> ()
    %cst_60 = arith.constant dense<0.000000e+00> : vector<8x32x32xf32>
    %121 = tpu.matmul %118, %120, %cst_60 {dimension_numbers = #tpu.dot_dimension_numbers<[2], [2], [1], [1], [0, 0, 0, 1, 1, 1], [0], [0]>} : vector<8x32x8xbf16>, vector<8x32x8xbf16>, vector<8x32x32xf32> -> vector<8x32x32xf32>
    "tpu.trace_stop"() : () -> ()
    %cst_61 = arith.constant dense<0xFF800000> : vector<8x32xf32>
    %122 = vector.multi_reduction <maximumf>, %121, %cst_61 [2] : vector<8x32x32xf32> to vector<8x32xf32>
    %123 = vector.shape_cast %122 : vector<8x32xf32> to vector<8x32x1xf32>
    %124 = vector.broadcast %123 : vector<8x32x1xf32> to vector<8x32x32xf32>
    %125 = arith.subf %121, %124 : vector<8x32x32xf32>
    %126 = math.exp %125 : vector<8x32x32xf32>
    %cst_62 = arith.constant dense<0.000000e+00> : vector<8x32xf32>
    %127 = vector.multi_reduction <add>, %126, %cst_62 [2] : vector<8x32x32xf32> to vector<8x32xf32>
    %128 = vector.shape_cast %127 : vector<8x32xf32> to vector<8x32x1xf32>
    %129 = tpu.reciprocal %128 {approx = true} : vector<8x32x1xf32> -> vector<8x32x1xf32>
    %130 = vector.shape_cast %129 : vector<8x32x1xf32> to vector<2x4x32x1xf32>
    %131 = arith.truncf %126 : vector<8x32x32xf32> to vector<8x32x32xbf16>
    %132 = vector.shape_cast %131 : vector<8x32x32xbf16> to vector<2x4x32x32xbf16>
    %c0_63 = arith.constant 0 : index
    %c0_64 = arith.constant 0 : index
    %c0_65 = arith.constant 0 : index
    %133 = vector.load %arg3[%c0_63, %c0_64, %c0_65] : memref<2x32x32xbf16, #tpu.memory_space<vmem>>, vector<2x32x8xbf16>
    %134 = vector.extract_strided_slice %132 {offsets = [0, 0, 0, 0], sizes = [2, 1, 32, 32], strides = [1, 1, 1, 1]} : vector<2x4x32x32xbf16> to vector<2x1x32x32xbf16>
    %135 = vector.shape_cast %134 : vector<2x1x32x32xbf16> to vector<2x32x32xbf16>
    "tpu.trace_start"() <{level = 10 : i32, message = "bqk,bkd->bqd"}> : () -> ()
    %cst_66 = arith.constant dense<0.000000e+00> : vector<2x32x8xf32>
    %136 = tpu.matmul %135, %133, %cst_66 {dimension_numbers = #tpu.dot_dimension_numbers<[2], [1], [1], [2], [0, 0, 0, 1, 1, 2], [0], [0]>} : vector<2x32x32xbf16>, vector<2x32x8xbf16>, vector<2x32x8xf32> -> vector<2x32x8xf32>
    "tpu.trace_stop"() : () -> ()
    %137 = vector.extract_strided_slice %130 {offsets = [0, 0, 0, 0], sizes = [2, 1, 32, 1], strides = [1, 1, 1, 1]} : vector<2x4x32x1xf32> to vector<2x1x32x1xf32>
    %138 = vector.shape_cast %137 : vector<2x1x32x1xf32> to vector<2x32x1xf32>
    %139 = vector.broadcast %138 : vector<2x32x1xf32> to vector<2x32x8xf32>
    %140 = arith.mulf %136, %139 : vector<2x32x8xf32>
    %c0_67 = arith.constant 0 : index
    %c0_68 = arith.constant 0 : index
    %c0_69 = arith.constant 0 : index
    %141 = vector.load %arg7[%c0_67, %c0_68, %c0_69] : memref<2x32x32xf32, #tpu.memory_space<vmem>>, vector<2x32x8xf32>
    tpu.vector_store %arg7[%c0_67, %c0_68, %c0_69], %140 {strides = array<i32>} : memref<2x32x32xf32, #tpu.memory_space<vmem>>, vector<2x32x8xf32>,
    %c0_70 = arith.constant 0 : index
    %c0_71 = arith.constant 0 : index
    %c8_72 = arith.constant 8 : index
    %142 = vector.load %arg3[%c0_70, %c0_71, %c8_72] : memref<2x32x32xbf16, #tpu.memory_space<vmem>>, vector<2x32x8xbf16>
    %143 = vector.extract_strided_slice %132 {offsets = [0, 1, 0, 0], sizes = [2, 1, 32, 32], strides = [1, 1, 1, 1]} : vector<2x4x32x32xbf16> to vector<2x1x32x32xbf16>
    %144 = vector.shape_cast %143 : vector<2x1x32x32xbf16> to vector<2x32x32xbf16>
    "tpu.trace_start"() <{level = 10 : i32, message = "bqk,bkd->bqd"}> : () -> ()
    %cst_73 = arith.constant dense<0.000000e+00> : vector<2x32x8xf32>
    %145 = tpu.matmul %144, %142, %cst_73 {dimension_numbers = #tpu.dot_dimension_numbers<[2], [1], [1], [2], [0, 0, 0, 1, 1, 2], [0], [0]>} : vector<2x32x32xbf16>, vector<2x32x8xbf16>, vector<2x32x8xf32> -> vector<2x32x8xf32>
    "tpu.trace_stop"() : () -> ()
    %146 = vector.extract_strided_slice %130 {offsets = [0, 1, 0, 0], sizes = [2, 1, 32, 1], strides = [1, 1, 1, 1]} : vector<2x4x32x1xf32> to vector<2x1x32x1xf32>
    %147 = vector.shape_cast %146 : vector<2x1x32x1xf32> to vector<2x32x1xf32>
    %148 = vector.broadcast %147 : vector<2x32x1xf32> to vector<2x32x8xf32>
    %149 = arith.mulf %145, %148 : vector<2x32x8xf32>
    %c0_74 = arith.constant 0 : index
    %c0_75 = arith.constant 0 : index
    %c8_76 = arith.constant 8 : index
    %150 = vector.load %arg7[%c0_74, %c0_75, %c8_76] : memref<2x32x32xf32, #tpu.memory_space<vmem>>, vector<2x32x8xf32>
    tpu.vector_store %arg7[%c0_74, %c0_75, %c8_76], %149 {strides = array<i32>} : memref<2x32x32xf32, #tpu.memory_space<vmem>>, vector<2x32x8xf32>,
    %c0_77 = arith.constant 0 : index
    %c0_78 = arith.constant 0 : index
    %c16 = arith.constant 16 : index
    %151 = vector.load %arg3[%c0_77, %c0_78, %c16] : memref<2x32x32xbf16, #tpu.memory_space<vmem>>, vector<2x32x8xbf16>
    %152 = vector.extract_strided_slice %132 {offsets = [0, 2, 0, 0], sizes = [2, 1, 32, 32], strides = [1, 1, 1, 1]} : vector<2x4x32x32xbf16> to vector<2x1x32x32xbf16>
    %153 = vector.shape_cast %152 : vector<2x1x32x32xbf16> to vector<2x32x32xbf16>
    "tpu.trace_start"() <{level = 10 : i32, message = "bqk,bkd->bqd"}> : () -> ()
    %cst_79 = arith.constant dense<0.000000e+00> : vector<2x32x8xf32>
    %154 = tpu.matmul %153, %151, %cst_79 {dimension_numbers = #tpu.dot_dimension_numbers<[2], [1], [1], [2], [0, 0, 0, 1, 1, 2], [0], [0]>} : vector<2x32x32xbf16>, vector<2x32x8xbf16>, vector<2x32x8xf32> -> vector<2x32x8xf32>
    "tpu.trace_stop"() : () -> ()
    %155 = vector.extract_strided_slice %130 {offsets = [0, 2, 0, 0], sizes = [2, 1, 32, 1], strides = [1, 1, 1, 1]} : vector<2x4x32x1xf32> to vector<2x1x32x1xf32>
    %156 = vector.shape_cast %155 : vector<2x1x32x1xf32> to vector<2x32x1xf32>
    %157 = vector.broadcast %156 : vector<2x32x1xf32> to vector<2x32x8xf32>
    %158 = arith.mulf %154, %157 : vector<2x32x8xf32>
    %c0_80 = arith.constant 0 : index
    %c0_81 = arith.constant 0 : index
    %c16_82 = arith.constant 16 : index
    %159 = vector.load %arg7[%c0_80, %c0_81, %c16_82] : memref<2x32x32xf32, #tpu.memory_space<vmem>>, vector<2x32x8xf32>
    tpu.vector_store %arg7[%c0_80, %c0_81, %c16_82], %158 {strides = array<i32>} : memref<2x32x32xf32, #tpu.memory_space<vmem>>, vector<2x32x8xf32>,
    %c0_83 = arith.constant 0 : index
    %c0_84 = arith.constant 0 : index
    %c24 = arith.constant 24 : index
    %160 = vector.load %arg3[%c0_83, %c0_84, %c24] : memref<2x32x32xbf16, #tpu.memory_space<vmem>>, vector<2x32x8xbf16>
    %161 = vector.extract_strided_slice %132 {offsets = [0, 3, 0, 0], sizes = [2, 1, 32, 32], strides = [1, 1, 1, 1]} : vector<2x4x32x32xbf16> to vector<2x1x32x32xbf16>
    %162 = vector.shape_cast %161 : vector<2x1x32x32xbf16> to vector<2x32x32xbf16>
    "tpu.trace_start"() <{level = 10 : i32, message = "bqk,bkd->bqd"}> : () -> ()
    %cst_85 = arith.constant dense<0.000000e+00> : vector<2x32x8xf32>
    %163 = tpu.matmul %162, %160, %cst_85 {dimension_numbers = #tpu.dot_dimension_numbers<[2], [1], [1], [2], [0, 0, 0, 1, 1, 2], [0], [0]>} : vector<2x32x32xbf16>, vector<2x32x8xbf16>, vector<2x32x8xf32> -> vector<2x32x8xf32>
    "tpu.trace_stop"() : () -> ()
    %164 = vector.extract_strided_slice %130 {offsets = [0, 3, 0, 0], sizes = [2, 1, 32, 1], strides = [1, 1, 1, 1]} : vector<2x4x32x1xf32> to vector<2x1x32x1xf32>
    %165 = vector.shape_cast %164 : vector<2x1x32x1xf32> to vector<2x32x1xf32>
    %166 = vector.broadcast %165 : vector<2x32x1xf32> to vector<2x32x8xf32>
    %167 = arith.mulf %163, %166 : vector<2x32x8xf32>
    %c0_86 = arith.constant 0 : index
    %c0_87 = arith.constant 0 : index
    %c24_88 = arith.constant 24 : index
    %168 = vector.load %arg7[%c0_86, %c0_87, %c24_88] : memref<2x32x32xf32, #tpu.memory_space<vmem>>, vector<2x32x8xf32>
    tpu.vector_store %arg7[%c0_86, %c0_87, %c24_88], %167 {strides = array<i32>} : memref<2x32x32xf32, #tpu.memory_space<vmem>>, vector<2x32x8xf32>,
    %c0_89 = arith.constant 0 : index
    %c0_90 = arith.constant 0 : index
    %c0_91 = arith.constant 0 : index
    %169 = vector.load %arg7[%c0_89, %c0_90, %c0_91] : memref<2x32x32xf32, #tpu.memory_space<vmem>>, vector<2x32x32xf32>
    %170 = arith.addf %169, %112 : vector<2x32x32xf32>
    %c0_92 = arith.constant 0 : index
    %c0_93 = arith.constant 0 : index
    %c0_94 = arith.constant 0 : index
    %171 = vector.load %arg7[%c0_92, %c0_93, %c0_94] : memref<2x32x32xf32, #tpu.memory_space<vmem>>, vector<2x32x32xf32>
    tpu.vector_store %arg7[%c0_92, %c0_93, %c0_94], %170 {strides = array<i32>} : memref<2x32x32xf32, #tpu.memory_space<vmem>>, vector<2x32x32xf32>,
    return
  }
  func.func @transform_0(%arg0: i32) -> (i32, i32, i32, i32) {
    %c0_i32 = arith.constant 0 : i32
    %c0_i32_0 = arith.constant 0 : i32
    %c0_i32_1 = arith.constant 0 : i32
    %c0_i32_2 = arith.constant 0 : i32
    return %arg0, %c0_i32, %c0_i32_0, %c0_i32_1 : i32, i32, i32, i32
  }
  func.func @transform_1(%arg0: i32) -> (i32, i32, i32, i32) {
    %c0_i32 = arith.constant 0 : i32
    %c0_i32_0 = arith.constant 0 : i32
    %c0_i32_1 = arith.constant 0 : i32
    %c0_i32_2 = arith.constant 0 : i32
    return %arg0, %c0_i32, %c0_i32_0, %c0_i32_1 : i32, i32, i32, i32
  }
  func.func @transform_2(%arg0: i32) -> (i32, i32, i32) {
    %c0_i32 = arith.constant 0 : i32
    %c0_i32_0 = arith.constant 0 : i32
    %c0_i32_1 = arith.constant 0 : i32
    return %arg0, %c0_i32, %c0_i32_0 : i32, i32, i32
  }
  func.func @transform_3(%arg0: i32) -> (i32, i32, i32) {
    %c0_i32 = arith.constant 0 : i32
    %c0_i32_0 = arith.constant 0 : i32
    %c0_i32_1 = arith.constant 0 : i32
    %c0_i32_2 = arith.constant 0 : i32
    return %c0_i32, %c0_i32_0, %c0_i32_1 : i32, i32, i32
  }
  func.func @transform_4(%arg0: i32) -> (i32, i32, i32) {
    %c0_i32 = arith.constant 0 : i32
    %c0_i32_0 = arith.constant 0 : i32
    %c0_i32_1 = arith.constant 0 : i32
    %c0_i32_2 = arith.constant 0 : i32
    return %c0_i32, %c0_i32_0, %c0_i32_1 : i32, i32, i32
  }
  func.func @transform_5(%arg0: i32) -> (i32, i32, i32) {
    %c0_i32 = arith.constant 0 : i32
    %c0_i32_0 = arith.constant 0 : i32
    %c0_i32_1 = arith.constant 0 : i32
    %c0_i32_2 = arith.constant 0 : i32
    return %c0_i32, %c0_i32_0, %c0_i32_1 : i32, i32, i32
  }
  func.func @transform_6(%arg0: i32) -> (i32, i32, i32) {
    %c0_i32 = arith.constant 0 : i32
    %c0_i32_0 = arith.constant 0 : i32
    %c0_i32_1 = arith.constant 0 : i32
    return %arg0, %c0_i32, %c0_i32_0 : i32, i32, i32
  }
}

</mosaic_0001>

<bundles_post_ra>
// kernel: lepe_attention.1
= control target key start
LH: loop header
LB: loop body
LE: loop exit
PB: predicated region body
PF: predicated region fallthrough
CT: control target
= control target key end

     0   :  { %s3485_s21 = smov 0   ;;  %s4622_s0 = inlined_call_operand.vmem [shape: bf16[4,4,32,8], index: 0, kind: input, shape index: {}]   ;;  %s4623_s1 = inlined_call_operand.vmem [shape: bf16[4,4,32,8], index: 1, kind: input, shape index: {}]   ;;  %s4624_s2 = inlined_call_operand.vmem [shape: bf16[4,32,32], index: 2, kind: input, shape index: {}]   ;;  %s4625_s3 = inlined_call_operand.vmem [shape: f32[9,32,1], index: 3, kind: input, shape index: {}]   ;;  %s4626_s4 = inlined_call_operand.vmem [shape: f32[9,1,32], index: 4, kind: input, shape index: {}]   ;;  %s4627_s5 = inlined_call_operand.vmem [shape: f32[1,1,32], index: 5, kind: input, shape index: {}]   ;;  %s4628_s6 = inlined_call_operand.vmem [shape: f32[4,32,32], index: 6, kind: output, shape index: {}]  }
   0x1 LB: > { %s2815_s22 = sadd.s32 4294967295, %s3441_s21   ;;  %p2819_p0 = scmp.ge.s32.totalorder %s3441_s21, 1  ;;  %s3441_s21 = sphi %s3485_s21, %s16_s21  }
   0x2   : > { %p238_p1 = scmp.lt.s32.totalorder %s3441_s21, 3 }
   0x4   : > { %p239_p2 = pnand %p2819_p0, %p238_p1 }
   0x6   : > { %242 = sbr.rel (%p239_p2) target bundleno = 829 (0x33d), region = 44 }
   0xd   : > { %s2820_s23 = sshll.u32 %s2815_s22, 1  ;;  %vm1058_vm0 = vcmask 64512   ;;  %s3443_s11 = smov 120   ;;  %vm1617_vm1 = vcmask 261120   ;;  %vm2302_vm7 = vcmask 130112   ;;  %vm2501_vm8 = vcmask 195712  }
   0xe   : > { %p283_p3 = scmp.lt.s32.totalorder %s2820_s23, 3  ;;  %s3444_s12 = smov 112   ;;  %vm2700_vm9 = vcmask 261312  }
   0xf   : > { %s3445_s13 = smov 104   ;;  %s3448_s20 = smov 16  }
  0x10   : > { %s4659_s23 = smov (!%p283_p3, %s2820_s23), 3  ;;  %s3449_s22 = smov 24  }
  0x11   : > { %s2948_s24 = sshll.u32 %s4659_s23, 6  ;;  %s2950_s7 = sshll.u32 %s4659_s23, 4 }
  0x12   : > { %s3499_s27 = scalar_lea.vmem %s4623_s1, %s2948_s24  ;;  %s3506_s30 = scalar_lea.vmem %s4622_s0, %s2948_s24 }
  0x13   : > { %v3275_v0 = vld [vmem:[%s3499_s27] sm:$0xff]   ;;  %v3276_v1 = vld [vmem:[%s3499_s27 + $0x10] sm:$0xff]   ;;  %v3277_v3 = vld [vmem:[%s3499_s27 + $0x8] sm:$0xff]   ;;  %s3553_s10 = scalar_lea.vmem %s4624_s2, %s2950_s7  ;;  %s2951_s16 = sshll.u32 %s4659_s23, 5 }
  0x14   : > { %3242 = vmatprep.subr.msk.bf16.mxu0 %vm1058_vm0, %v3275_v0  ;;  %v1066_v2 = vsel %vm1058_vm0, %v3275_v0, 0  ;;  %3244 = vmatprep.subr.msk.bf16.mxu1 %vm1058_vm0, %v3276_v1  ;;  %v1137_v4 = vsel %vm1058_vm0, %v3276_v1, 0  ;;  %v3278_v5 = vld [vmem:[%s3499_s27 + $0x18] sm:$0xff]   ;;  %v2969_v6 = vld [vmem:[%s3506_s30] sm:$0xff]   ;;  %v3036_v7 = vld [vmem:[%s3506_s30 + $0x10] sm:$0xff]   ;;  %v1069_v21 = vsel %vm1058_vm0, %v3277_v3, 0  ;;  %s4469_s19 = scalar_lea.vmem %s4628_s6, %s2951_s16 }
  0x15   : > { %3115 = vmatpush3.bf16.xpose.msra.mxu0 %v1066_v2  ;;  %3123 = vmatpush3.bf16.xpose.msra.mxu1 %v1137_v4  ;;  %v3035_v8 = vld [vmem:[%s3506_s30 + $0x8] sm:$0xff]   ;;  %v2970_v9 = vunpack.c.l.bf16 %v2969_v6  ;;  %v2971_v10 = vunpack.c.h.bf16 %v2969_v6  ;;  %v2978_v11 = vunpack.c.l.bf16 %v3036_v7  ;;  %v3037_v12 = vld [vmem:[%s3506_s30 + $0x18] sm:$0xff]   ;;  %v2979_v13 = vunpack.c.h.bf16 %v3036_v7  ;;  %v3279_v27 = vld [vmem:[%s3499_s27 + $0x20] sm:$0xff]   ;;  %s3447_s23 = smov 8  }
  0x16   : > { %3243 = vmatprep.subr.msk.bf16.mxu0 %vm1058_vm0, %v3277_v3  ;;  %3245 = vmatprep.subr.msk.bf16.mxu1 %vm1058_vm0, %v3278_v5  ;;  %v2974_v14 = vunpack.c.l.bf16 %v3035_v8  ;;  %v2975_v15 = vunpack.c.h.bf16 %v3035_v8  ;;  %v2982_v16 = vunpack.c.l.bf16 %v3037_v12  ;;  %v2983_v20 = vunpack.c.h.bf16 %v3037_v12  ;;  %v3280_v28 = vld [vmem:[%s3499_s27 + $0x30] sm:$0xff]   ;;  %v3038_v32 = vld [vmem:[%s3506_s30 + $0x20] sm:$0xff]   ;;  %v3281_v43 = vld [vmem:[%s3499_s27 + $0x28] sm:$0xff]  }
  0x17   : > { %v968_v17 = vmul.f32 0.35355338, %v2970_v9  ;;  %v969_v18 = vmul.f32 0.35355338, %v2971_v10  ;;  %v972_v19 = vmul.f32 0.35355338, %v2978_v11  ;;  %v2986_v34 = vunpack.c.l.bf16 %v3038_v32 }
  0x18   : > { %v1140_v22 = vsel %vm1058_vm0, %v3278_v5, 0  ;;  %v973_v23 = vmul.f32 0.35355338, %v2979_v13  ;;  %v970_v25 = vmul.f32 0.35355338, %v2974_v14  ;;  %v3040_v33 = vld [vmem:[%s3506_s30 + $0x30] sm:$0xff]   ;;  %v2987_v35 = vunpack.c.h.bf16 %v3038_v32 }
  0x19   : > { %v1000_v24 = vpack.c.bf16 %v969_v18, %v968_v17  ;;  %v971_v26 = vmul.f32 0.35355338, %v2975_v15  ;;  %v974_v30 = vmul.f32 0.35355338, %v2982_v16  ;;  %v975_v31 = vmul.f32 0.35355338, %v2983_v20 }
  0x1a   : > { %v1002_v29 = vpack.c.bf16 %v973_v23, %v972_v19  ;;  %v2994_v37 = vunpack.c.l.bf16 %v3040_v33  ;;  %v2995_v38 = vunpack.c.h.bf16 %v3040_v33  ;;  %v976_v40 = vmul.f32 0.35355338, %v2986_v34  ;;  %v3282_v47 = vld [vmem:[%s3499_s27 + $0x38] sm:$0xff]   ;;  %v3039_v49 = vld [vmem:[%s3506_s30 + $0x28] sm:$0xff]   ;;  %v3042_v54 = vld [vmem:[%s3506_s30 + $0x40] sm:$0xff]  }
  0x1b   : > { %3118 = vmatprep.mubr.msk.bf16.mxu0 %vm1058_vm0, %v1000_v24  ;;  %v1001_v36 = vpack.c.bf16 %v971_v26, %v970_v25  ;;  %v1003_v39 = vpack.c.bf16 %v975_v31, %v974_v30  ;;  %v977_v41 = vmul.f32 0.35355338, %v2987_v35  ;;  %v1208_v42 = vsel %vm1058_vm0, %v3279_v27, 0  ;;  %v3041_v52 = vld [vmem:[%s3506_s30 + $0x38] sm:$0xff]   ;;  %v3044_v58 = vld [vmem:[%s3506_s30 + $0x50] sm:$0xff]   ;;  %v3283_v61 = vld [vmem:[%s3499_s27 + $0x40] sm:$0xff]  }
  0x1c   : > { %3126 = vmatprep.mubr.msk.bf16.mxu1 %vm1058_vm0, %v1002_v29  ;;  %v980_v44 = vmul.f32 0.35355338, %v2994_v37  ;;  %v981_v45 = vmul.f32 0.35355338, %v2995_v38  ;;  %v1279_v46 = vsel %vm1058_vm0, %v3280_v28, 0  ;;  %v2990_v51 = vunpack.c.l.bf16 %v3039_v49  ;;  %v3284_v1 = vld [vmem:[%s3499_s27 + $0x50] sm:$0xff]  }
  0x1d   : > { %3117 = vmatpush3.bf16.xpose.msra.mxu0 %v1069_v21  ;;  %3125 = vmatpush3.bf16.xpose.msra.mxu1 %v1140_v22  ;;  %v1004_v48 = vpack.c.bf16 %v977_v41, %v976_v40  ;;  %v2991_v53 = vunpack.c.h.bf16 %v3039_v49  ;;  %v1211_v55 = vsel %vm1058_vm0, %v3281_v43, 0  ;;  %v2998_v56 = vunpack.c.l.bf16 %v3041_v52  ;;  %v3043_v2 = vld [vmem:[%s3506_s30 + $0x48] sm:$0xff]   ;;  %v3045_v5 = vld [vmem:[%s3506_s30 + $0x58] sm:$0xff]   ;;  %v3291_v13 = vld [vmem:[%s3553_s10 + $0x10] sm:$0xff]  }
  0x1e   : > { %3246 = vmatprep.subr.msk.bf16.mxu0 %vm1058_vm0, %v3279_v27  ;;  %3248 = vmatprep.subr.msk.bf16.mxu1 %vm1058_vm0, %v3280_v28  ;;  %v1006_v50 = vpack.c.bf16 %v981_v45, %v980_v44  ;;  %v2999_v57 = vunpack.c.h.bf16 %v3041_v52  ;;  %v1282_v59 = vsel %vm1058_vm0, %v3282_v47, 0  ;;  %v978_v60 = vmul.f32 0.35355338, %v2990_v51  ;;  %v3285_v19 = vld [vmem:[%s3499_s27 + $0x48] sm:$0xff]   ;;  %v3286_v20 = vld [vmem:[%s3499_s27 + $0x58] sm:$0xff]   ;;  %v3046_v30 = vld [vmem:[%s3506_s30 + $0x60] sm:$0xff]  }
  0x1f   : > { %v3002_v62 = vunpack.c.l.bf16 %v3042_v54  ;;  %v3003_v63 = vunpack.c.h.bf16 %v3042_v54  ;;  %v979_v0 = vmul.f32 0.35355338, %v2991_v53  ;;  %v3010_v3 = vunpack.c.l.bf16 %v3044_v58  ;;  %2201 = vrot.lane.b32.xlu1 %v3291_v13, %s3443_s11  ;;  %v3292_v27 = vld [vmem:[%s3553_s10 + $0x8] sm:$0xff]   ;;  %v3295_v31 = vld [vmem:[%s3553_s10] sm:$0xff]   ;;  %v3048_v32 = vld [vmem:[%s3506_s30 + $0x70] sm:$0xff]  }
  0x20   : > { %v3011_v4 = vunpack.c.h.bf16 %v3044_v58  ;;  %v982_v6 = vmul.f32 0.35355338, %v2998_v56  ;;  %v983_v7 = vmul.f32 0.35355338, %v2999_v57  ;;  %v3006_v10 = vunpack.c.l.bf16 %v3043_v2  ;;  %v3287_v33 = vld [vmem:[%s3499_s27 + $0x60] sm:$0xff]   ;;  %v3293_v34 = vld [vmem:[%s3553_s10 + $0x18] sm:$0xff]   ;;  %2130 = vrot.lane.b32.xlu0 %v3295_v31, %s3443_s11 }
  0x21   : > { %v984_v8 = vmul.f32 0.35355338, %v3002_v62  ;;  %v985_v9 = vmul.f32 0.35355338, %v3003_v63  ;;  %v3007_v11 = vunpack.c.h.bf16 %v3043_v2  ;;  %v3014_v12 = vunpack.c.l.bf16 %v3045_v5  ;;  %v3288_v35 = vld [vmem:[%s3499_s27 + $0x70] sm:$0xff]   ;;  %v3289_v53 = vld [vmem:[%s3499_s27 + $0x68] sm:$0xff]  }
  0x22   : > { %v1005_v14 = vpack.c.bf16 %v979_v0, %v978_v60  ;;  %v988_v15 = vmul.f32 0.35355338, %v3010_v3  ;;  %v989_v16 = vmul.f32 0.35355338, %v3011_v4  ;;  %v1007_v17 = vpack.c.bf16 %v983_v7, %v982_v6  ;;  %v3294_v38 = vld [vmem:[%s3553_s10 + $0x10] sm:$0xff]   ;;  %v3300_v60 = vld [vmem:[%s3553_s10] sm:$0xff]  }
  0x23   : > { %v1350_v18 = vsel %vm1058_vm0, %v3283_v61, 0  ;;  %v3015_v21 = vunpack.c.h.bf16 %v3045_v5  ;;  %v986_v22 = vmul.f32 0.35355338, %v3006_v10  ;;  %v987_v23 = vmul.f32 0.35355338, %v3007_v11  ;;  %2132 = vrot.lane.b32.xlu1 %v3292_v27, %s3443_s11  ;;  %v3298_v58 = vld [vmem:[%s3553_s10 + $0x10] sm:$0xff]  }
  0x24   : > { %3119 = vmatmul.mubr.msk.bf16.vlgmr.msra.gmra.mrb[0].mxu0 %vm1058_vm0, %v1001_v36  ;;  %3127 = vmatmul.mubr.msk.bf16.vlgmr.msra.gmra.mrb[0].mxu1 %vm1058_vm0, %v1003_v39  ;;  %v1421_v24 = vsel %vm1058_vm0, %v3284_v1, 0  ;;  %v1008_v25 = vpack.c.bf16 %v985_v9, %v984_v8  ;;  %v990_v26 = vmul.f32 0.35355338, %v3014_v12  ;;  %v1010_v28 = vpack.c.bf16 %v989_v16, %v988_v15  ;;  %v3297_v36 = vld [vmem:[%s3553_s10] sm:$0xff]   ;;  %v3301_v10 = vld [vmem:[%s3553_s10 + $0x10] sm:$0xff]   ;;  %v3303_v12 = vld [vmem:[%s3553_s10 + $0x18] sm:$0xff]  }
  0x25   : > { %3131 = vmatpush3.bf16.xpose.msra.mxu0 %v1208_v42  ;;  %3139 = vmatpush3.bf16.xpose.msra.mxu1 %v1279_v46  ;;  %v991_v29 = vmul.f32 0.35355338, %v3015_v21  ;;  %v1353_v37 = vsel %vm1058_vm0, %v3285_v19, 0  ;;  %v1424_v39 = vsel %vm1058_vm0, %v3286_v20, 0  ;;  %v3018_v40 = vunpack.c.l.bf16 %v3046_v30  ;;  %v3299_v42 = vld [vmem:[%s3553_s10 + $0x8] sm:$0xff]   ;;  %v3302_v11 = vld [vmem:[%s3553_s10] sm:$0xff]  }
  0x26   : > { %3247 = vmatprep.subr.msk.bf16.mxu0 %vm1058_vm0, %v3281_v43  ;;  %3249 = vmatprep.subr.msk.bf16.mxu1 %vm1058_vm0, %v3282_v47  ;;  %v3019_v41 = vunpack.c.h.bf16 %v3046_v30  ;;  %v3026_v43 = vunpack.c.l.bf16 %v3048_v32  ;;  %v3027_v44 = vunpack.c.h.bf16 %v3048_v32  ;;  %v1009_v47 = vpack.c.bf16 %v987_v23, %v986_v22  ;;  %v3304_v13 = vld [vmem:[%s3553_s10 + $0x8] sm:$0xff]  }
  0x27   : > { %3134 = vmatprep.mubr.msk.bf16.mxu0 %vm1058_vm0, %v1004_v48  ;;  %3142 = vmatprep.mubr.msk.bf16.mxu1 %vm1058_vm0, %v1006_v50  ;;  %v992_v45 = vmul.f32 0.35355338, %v3018_v40  ;;  %v3296_v50 = vld [vmem:[%s3553_s10 + $0x18] sm:$0xff]   ;;  %v1011_v51 = vpack.c.bf16 %v991_v29, %v990_v26  ;;  %v1492_v52 = vsel %vm1058_vm0, %v3287_v33, 0  ;;  %v1563_v54 = vsel %vm1058_vm0, %v3288_v35, 0 }
  0x28   : > { %2203 = vrot.lane.b32.xlu1 %v3293_v34, %s3443_s11  ;;  %2329 = vrot.lane.b32.xlu0 %v3297_v36, %s3444_s12  ;;  %v993_v46 = vmul.f32 0.35355338, %v3019_v41  ;;  %v996_v48 = vmul.f32 0.35355338, %v3026_v43  ;;  %v997_v49 = vmul.f32 0.35355338, %v3027_v44 }
  0x29   : > { %v1495_v2 = vsel %vm1058_vm0, %v3289_v53, 0  ;;  %v3446_v16 = vmov 0  }
  0x2a   : > { %v1012_v56 = vpack.c.bf16 %v993_v46, %v992_v45  ;;  %v1014_v57 = vpack.c.bf16 %v997_v49, %v996_v48  ;;  %3274 = vset.pattern.permute.xlu1 %v3446_v16  ;;  %3273 = vset.pattern.permute.xlu0 %v3446_v16 }
  0x2c   : > { %2400 = vrot.lane.b32.xlu1 %v3294_v38, %s3444_s12  ;;  %2331 = vrot.lane.b32.xlu0 %v3299_v42, %s3444_s12 }
  0x2d   : > { %3133 = vmatpush3.bf16.xpose.msra.mxu0 %v1211_v55  ;;  %3141 = vmatpush3.bf16.xpose.msra.mxu1 %v1282_v59  ;;  %v3290_v55 = vld [vmem:[%s3499_s27 + $0x78] sm:$0xff]   ;;  %v3047_v59 = vld [vmem:[%s3506_s30 + $0x68] sm:$0xff]  }
  0x2e   : > { %3250 = vmatprep.subr.msk.bf16.mxu0 %vm1058_vm0, %v3283_v61  ;;  %3252 = vmatprep.subr.msk.bf16.mxu1 %vm1058_vm0, %v3284_v1  ;;  %v3049_v61 = vld [vmem:[%s3506_s30 + $0x78] sm:$0xff]   ;;  %v3022_v62 = vunpack.c.l.bf16 %v3047_v59  ;;  %v3023_v63 = vunpack.c.h.bf16 %v3047_v59  ;;  %v1566_v3 = vsel %vm1058_vm0, %v3290_v55, 0 }
  0x2f   : > { %v3030_v0 = vunpack.c.l.bf16 %v3049_v61  ;;  %v3031_v1 = vunpack.c.h.bf16 %v3049_v61 }
  0x30   : > { %2402 = vrot.lane.b32.xlu1 %v3296_v50, %s3444_s12  ;;  %2528 = vrot.lane.b32.xlu0 %v3300_v60, %s3445_s13  ;;  %v994_v4 = vmul.f32 0.35355338, %v3022_v62  ;;  %v995_v5 = vmul.f32 0.35355338, %v3023_v63 }
  0x31   : > { %v998_v6 = vmul.f32 0.35355338, %v3030_v0  ;;  %v999_v7 = vmul.f32 0.35355338, %v3031_v1 }
  0x32   : > { %v1013_v8 = vpack.c.bf16 %v995_v5, %v994_v4 }
  0x33   : > { %v1015_v9 = vpack.c.bf16 %v999_v7, %v998_v6 }
  0x34   : > { %3135 = vmatmul.mubr.msk.bf16.vlgmr.msra.gmra.mrb[4].mxu0 %vm1058_vm0, %v1005_v14  ;;  %3143 = vmatmul.mubr.msk.bf16.vlgmr.msra.gmra.mrb[4].mxu1 %vm1058_vm0, %v1007_v17 }
  0x35   : > { %3147 = vmatpush3.bf16.xpose.msra.mxu0 %v1350_v18  ;;  %3155 = vmatpush3.bf16.xpose.msra.mxu1 %v1421_v24 }
  0x36   : > { %3251 = vmatprep.subr.msk.bf16.mxu0 %vm1058_vm0, %v3285_v19  ;;  %3253 = vmatprep.subr.msk.bf16.mxu1 %vm1058_vm0, %v3286_v20 }
  0x37   : > { %3150 = vmatprep.mubr.msk.bf16.mxu0 %vm1058_vm0, %v1008_v25  ;;  %3158 = vmatprep.mubr.msk.bf16.mxu1 %vm1058_vm0, %v1010_v28 }
  0x38   : > { %2599 = vrot.lane.b32.xlu1 %v3298_v58, %s3445_s13 }
  0x3d   : > { %3149 = vmatpush3.bf16.xpose.msra.mxu0 %v1353_v37  ;;  %3157 = vmatpush3.bf16.xpose.msra.mxu1 %v1424_v39 }
  0x3e   : > { %3254 = vmatprep.subr.msk.bf16.mxu0 %vm1058_vm0, %v3287_v33  ;;  %3256 = vmatprep.subr.msk.bf16.mxu1 %vm1058_vm0, %v3288_v35 }
  0x44   : > { %3151 = vmatmul.mubr.msk.bf16.vlgmr.msra.gmra.mrb[8].mxu0 %vm1058_vm0, %v1009_v47  ;;  %3159 = vmatmul.mubr.msk.bf16.vlgmr.msra.gmra.mrb[8].mxu1 %vm1058_vm0, %v1011_v51 }
  0x45   : > { %3163 = vmatpush3.bf16.xpose.msra.mxu0 %v1492_v52  ;;  %3171 = vmatpush3.bf16.xpose.msra.mxu1 %v1563_v54 }
  0x46   : > { %3255 = vmatprep.subr.msk.bf16.mxu0 %vm1058_vm0, %v3289_v53  ;;  %3257 = vmatprep.subr.msk.bf16.mxu1 %vm1058_vm0, %v3290_v55 }
  0x47   : > { %3166 = vmatprep.mubr.msk.bf16.mxu0 %vm1058_vm0, %v1012_v56  ;;  %3174 = vmatprep.mubr.msk.bf16.mxu1 %vm1058_vm0, %v1014_v57 }
  0x4d   : > { %3165 = vmatpush3.bf16.xpose.msra.mxu0 %v1495_v2  ;;  %3173 = vmatpush3.bf16.xpose.msra.mxu1 %v1566_v3 }
  0x4e   : > { %3186 = vmatprep.subr.bf16.mxu1 %v3301_v10  ;;  %3178 = vmatprep.subr.bf16.mxu0 %v3302_v11 }
  0x54   : > { %3167 = vmatmul.mubr.msk.bf16.vlgmr.msra.gmra.mrb[12].mxu0 %vm1058_vm0, %v1013_v8  ;;  %3175 = vmatmul.mubr.msk.bf16.vlgmr.msra.gmra.mrb[12].mxu1 %vm1058_vm0, %v1015_v9 }
  0x55   : > { %3187 = vmatpush3.bf16.msra.mxu1 %v3301_v10  ;;  %3179 = vmatpush3.bf16.msra.mxu0 %v3302_v11 }
  0x56   : > { %3188 = vmatprep.subr.bf16.mxu1 %v3303_v12  ;;  %3180 = vmatprep.subr.bf16.mxu0 %v3304_v13 }
  0x59   : > { %3189 = vmatpush3.bf16.msra.mxu1 %v3303_v12  ;;  %3181 = vmatpush3.bf16.msra.mxu0 %v3304_v13 }
  0x91   : > { %v3612_v14 = vpop.permute.xlu1 %2201 }
  0x92   : > { %v3614_v15 = vpop.permute.xlu0 %2130  ;;  %3202 = vmatprep.subr.bf16.mxu1 %v3612_v14 }
  0x93   : > { %3194 = vmatprep.subr.bf16.mxu0 %v3614_v15 }
  0xf7   : > { %v3618_v17 = vpop.f32.mrb[0].mxu0  ;;  %v3620_v18 = vpop.f32.mrb[0].mxu1 }
  0xf8   : > { %v3622_v19 = vpop.f32.mrb[1].mxu0  ;;  %v1624_v20 = vsel %vm1617_vm1, %v3618_v17, -inf  ;;  %v3626_v21 = vpop.f32.mrb[1].mxu1  ;;  %v1636_v22 = vsel %vm1617_vm1, %v3620_v18, -inf }
  0xf9   : > { %1625 = vmax.xlane.f32.xlu1 %v1624_v20  ;;  %v3630_v23 = vpop.f32.mrb[2].mxu0  ;;  %1637 = vmax.xlane.f32.xlu0 %v1636_v22  ;;  %v3632_v24 = vpop.f32.mrb[2].mxu1  ;;  %v1618_v28 = vsel %vm1617_vm1, %v3622_v19, -inf  ;;  %v1630_v30 = vsel %vm1617_vm1, %v3626_v21, -inf }
  0xfa   : > { %v3634_v25 = vpop.f32.mrb[3].mxu0  ;;  %v3636_v26 = vpop.f32.mrb[3].mxu1  ;;  %v1627_v27 = vsel %vm1617_vm1, %v3630_v23, -inf  ;;  %v1639_v29 = vsel %vm1617_vm1, %v3632_v24, -inf }
  0xfb   : > { %v1633_v31 = vsel %vm1617_vm1, %v3636_v26, -inf  ;;  %v1621_v32 = vsel %vm1617_vm1, %v3634_v25, -inf }
  0xfd   : > { %1628 = vmax.xlane.f32.xlu1 %v1627_v27  ;;  %1619 = vmax.xlane.f32.xlu0 %v1618_v28  ;;  %v3305_v27 = vld [vmem:[%s3553_s10 + $0x18] sm:$0xff]   ;;  %v3306_v28 = vld [vmem:[%s3553_s10 + $0x8] sm:$0xff]  }
 0x101   : > { %1640 = vmax.xlane.f32.xlu1 %v1639_v29  ;;  %1631 = vmax.xlane.f32.xlu0 %v1630_v30  ;;  %v347_v29 = vld [vmem:[%s4625_s3 + $0x8] sm:$0xff]  ;;  %v346_v30 = vld [vmem:[%s4625_s3] sm:$0xff] }
 0x105   : > { %1634 = vmax.xlane.f32.xlu1 %v1633_v31  ;;  %1622 = vmax.xlane.f32.xlu0 %v1621_v32  ;;  %v348_v31 = vld [vmem:[%s4625_s3 + $0x10] sm:$0xff]  ;;  %v349_v32 = vld [vmem:[%s4625_s3 + $0x18] sm:$0xff] }
 0x107   : > { %v3650_v33 = vpop.f32.mrb[4].mxu0  ;;  %v3654_v35 = vpop.f32.mrb[4].mxu1 }
 0x108   : > { %v3652_v34 = vpop.f32.mrb[5].mxu0  ;;  %v1648_v36 = vsel %vm1617_vm1, %v3650_v33, -inf  ;;  %v3658_v37 = vpop.f32.mrb[5].mxu1  ;;  %v1660_v43 = vsel %vm1617_vm1, %v3654_v35, -inf }
 0x109   : > { %v3660_v38 = vpop.f32.mrb[6].mxu0  ;;  %1649 = vmax.xlane.f32.xlu0 %v1648_v36  ;;  %v3664_v40 = vpop.f32.mrb[6].mxu1  ;;  %v1642_v45 = vsel %vm1617_vm1, %v3652_v34, -inf  ;;  %v1654_v47 = vsel %vm1617_vm1, %v3658_v37, -inf  ;;  %v2833_v36 = vld [vmem:[%s4625_s3 + $0x20] sm:$0xff] }
 0x10a   : > { %v3662_v39 = vpop.f32.mrb[7].mxu0  ;;  %v1651_v41 = vsel %vm1617_vm1, %v3660_v38, -inf  ;;  %v3668_v42 = vpop.f32.mrb[7].mxu1  ;;  %v1663_v44 = vsel %vm1617_vm1, %v3664_v40, -inf }
 0x10b   : > { %1652 = vmax.xlane.f32.xlu1 %v1651_v41  ;;  %v1645_v46 = vsel %vm1617_vm1, %v3662_v39, -inf  ;;  %v1657_v48 = vsel %vm1617_vm1, %v3668_v42, -inf  ;;  %v2834_v41 = vld [vmem:[%s4625_s3 + $0x28] sm:$0xff] }
 0x10d   : > { %1661 = vmax.xlane.f32.xlu0 %v1660_v43  ;;  %v2835_v43 = vld [vmem:[%s4625_s3 + $0x30] sm:$0xff] }
 0x10f   : > { %1664 = vmax.xlane.f32.xlu1 %v1663_v44  ;;  %v2836_v44 = vld [vmem:[%s4625_s3 + $0x38] sm:$0xff] }
 0x111   : > { %1643 = vmax.xlane.f32.xlu0 %v1642_v45  ;;  %v2839_v45 = vld [vmem:[%s4625_s3 + $0x40] sm:$0xff] }
 0x113   : > { %1646 = vmax.xlane.f32.xlu1 %v1645_v46  ;;  %v2840_v46 = vld [vmem:[%s4625_s3 + $0x48] sm:$0xff] }
 0x115   : > { %1655 = vmax.xlane.f32.xlu0 %v1654_v47  ;;  %v2841_v47 = vld [vmem:[%s4625_s3 + $0x50] sm:$0xff] }
 0x117   : > { %1658 = vmax.xlane.f32.xlu1 %v1657_v48  ;;  %v3682_v49 = vpop.f32.mrb[8].mxu0  ;;  %v3686_v51 = vpop.f32.mrb[8].mxu1  ;;  %v2842_v48 = vld [vmem:[%s4625_s3 + $0x58] sm:$0xff] }
 0x118   : > { %v3684_v50 = vpop.f32.mrb[9].mxu0  ;;  %v1672_v52 = vsel %vm1617_vm1, %v3682_v49, -inf  ;;  %v3690_v53 = vpop.f32.mrb[9].mxu1  ;;  %v1684_v59 = vsel %vm1617_vm1, %v3686_v51, -inf }
 0x119   : > { %v3692_v54 = vpop.f32.mrb[10].mxu0  ;;  %1673 = vmax.xlane.f32.xlu0 %v1672_v52  ;;  %v3696_v56 = vpop.f32.mrb[10].mxu1  ;;  %v1666_v61 = vsel %vm1617_vm1, %v3684_v50, -inf  ;;  %v1678_v63 = vsel %vm1617_vm1, %v3690_v53, -inf  ;;  %v2845_v52 = vld [vmem:[%s4625_s3 + $0x60] sm:$0xff] }
 0x11a   : > { %v3694_v55 = vpop.f32.mrb[11].mxu0  ;;  %v1675_v57 = vsel %vm1617_vm1, %v3692_v54, -inf  ;;  %v3700_v58 = vpop.f32.mrb[11].mxu1  ;;  %v1687_v60 = vsel %vm1617_vm1, %v3696_v56, -inf }
 0x11b   : > { %1676 = vmax.xlane.f32.xlu1 %v1675_v57  ;;  %v1669_v62 = vsel %vm1617_vm1, %v3694_v55, -inf  ;;  %v1681_v0 = vsel %vm1617_vm1, %v3700_v58, -inf  ;;  %v2846_v57 = vld [vmem:[%s4625_s3 + $0x68] sm:$0xff] }
 0x11d   : > { %1685 = vmax.xlane.f32.xlu0 %v1684_v59  ;;  %v2847_v59 = vld [vmem:[%s4625_s3 + $0x70] sm:$0xff] }
 0x11f   : > { %1688 = vmax.xlane.f32.xlu1 %v1687_v60  ;;  %v2848_v60 = vld [vmem:[%s4625_s3 + $0x78] sm:$0xff] }
 0x121   : > { %1667 = vmax.xlane.f32.xlu0 %v1666_v61  ;;  %v2851_v61 = vld [vmem:[%s4625_s3 + $0x80] sm:$0xff] }
 0x123   : > { %1670 = vmax.xlane.f32.xlu1 %v1669_v62  ;;  %v3801_v62 = vpop.permute.xlu1 %2132 }
 0x125   : > { %1679 = vmax.xlane.f32.xlu0 %v1678_v63  ;;  %v2852_v63 = vld [vmem:[%s4625_s3 + $0x88] sm:$0xff] }
 0x127   : > { %1682 = vmax.xlane.f32.xlu1 %v1681_v0  ;;  %v3714_v1 = vpop.f32.mrb[12].mxu0  ;;  %v3718_v3 = vpop.f32.mrb[12].mxu1  ;;  %v2853_v0 = vld [vmem:[%s4625_s3 + $0x90] sm:$0xff] }
 0x128   : > { %v3716_v2 = vpop.f32.mrb[13].mxu0  ;;  %v1696_v4 = vsel %vm1617_vm1, %v3714_v1, -inf  ;;  %v3722_v5 = vpop.f32.mrb[13].mxu1  ;;  %v1708_v11 = vsel %vm1617_vm1, %v3718_v3, -inf }
 0x129   : > { %v3724_v6 = vpop.f32.mrb[14].mxu0  ;;  %1697 = vmax.xlane.f32.xlu0 %v1696_v4  ;;  %v3728_v8 = vpop.f32.mrb[14].mxu1  ;;  %v1690_v13 = vsel %vm1617_vm1, %v3716_v2, -inf  ;;  %v1702_v20 = vsel %vm1617_vm1, %v3722_v5, -inf }
 0x12a   : > { %v3726_v7 = vpop.f32.mrb[15].mxu0  ;;  %v1699_v9 = vsel %vm1617_vm1, %v3724_v6, -inf  ;;  %v3732_v10 = vpop.f32.mrb[15].mxu1  ;;  %v1711_v12 = vsel %vm1617_vm1, %v3728_v8, -inf }
 0x12b   : > { %1700 = vmax.xlane.f32.xlu1 %v1699_v9  ;;  %v1693_v16 = vsel %vm1617_vm1, %v3726_v7, -inf  ;;  %v1705_v22 = vsel %vm1617_vm1, %v3732_v10, -inf  ;;  %v3809_v4 = vpop.permute.xlu1 %2203  ;;  %v2854_v9 = vld [vmem:[%s4625_s3 + $0x98] sm:$0xff] }
 0x12d   : > { %1709 = vmax.xlane.f32.xlu0 %v1708_v11  ;;  %v2857_v11 = vld [vmem:[%s4625_s3 + $0xa0] sm:$0xff] }
 0x12f   : > { %1712 = vmax.xlane.f32.xlu1 %v1711_v12  ;;  %v2858_v12 = vld [vmem:[%s4625_s3 + $0xa8] sm:$0xff] }
 0x131   : > { %1691 = vmax.xlane.f32.xlu0 %v1690_v13  ;;  %v2859_v13 = vld [vmem:[%s4625_s3 + $0xb0] sm:$0xff] }
 0x133   : > { %1694 = vmax.xlane.f32.xlu1 %v1693_v16  ;;  %v3823_v16 = vpop.permute.xlu1 %2400 }
 0x135   : > { %1703 = vmax.xlane.f32.xlu0 %v1702_v20  ;;  %v3825_v20 = vpop.permute.xlu0 %2329 }
 0x137   : > { %1706 = vmax.xlane.f32.xlu1 %v1705_v22  ;;  %v2860_v22 = vld [vmem:[%s4625_s3 + $0xb8] sm:$0xff] }
 0x148   : > { %2601 = vrot.lane.b32.xlu1 %v3305_v27, %s3445_s13  ;;  %v2863_v27 = vld [vmem:[%s4625_s3 + $0xc0] sm:$0xff] }
 0x14b   : > { %2530 = vrot.lane.b32.xlu0 %v3306_v28, %s3445_s13  ;;  %v3833_v28 = vpop.permute.xlu1 %2402 }
 0x14c   : > { %358 = vperm.xlu1 %3274, %v347_v29   ;;  %v3835_v29 = vpop.permute.xlu0 %2331 }
 0x14f   : > { %353 = vperm.xlu0 %3273, %v346_v30   ;;  %v2864_v30 = vld [vmem:[%s4625_s3 + $0xc8] sm:$0xff] }
 0x150   : > { %363 = vperm.xlu1 %3274, %v348_v31   ;;  %v2865_v31 = vld [vmem:[%s4625_s3 + $0xd0] sm:$0xff] }
 0x153   : > { %368 = vperm.xlu0 %3273, %v349_v32   ;;  %v2866_v32 = vld [vmem:[%s4625_s3 + $0xd8] sm:$0xff] }
 0x154   : > { %423 = vperm.xlu1 %3274, %v2833_v36   ;;  %v2869_v36 = vld [vmem:[%s4625_s3 + $0xe0] sm:$0xff] }
 0x157   : > { %428 = vperm.xlu0 %3273, %v2834_v41   ;;  %v3849_v41 = vpop.permute.xlu1 %2599 }
 0x158   : > { %433 = vperm.xlu1 %3274, %v2835_v43   ;;  %v3851_v43 = vpop.permute.xlu0 %2528 }
 0x15b   : > { %438 = vperm.xlu0 %3273, %v2836_v44   ;;  %v2870_v44 = vld [vmem:[%s4625_s3 + $0xe8] sm:$0xff] }
 0x15c   : > { %493 = vperm.xlu1 %3274, %v2839_v45   ;;  %v2871_v45 = vld [vmem:[%s4625_s3 + $0xf0] sm:$0xff] }
 0x15f   : > { %498 = vperm.xlu0 %3273, %v2840_v46  }
 0x160   : > { %503 = vperm.xlu1 %3274, %v2841_v47  }
 0x163   : > { %508 = vperm.xlu0 %3273, %v2842_v48  }
 0x164   : > { %563 = vperm.xlu1 %3274, %v2845_v52   ;;  %v2872_v52 = vld [vmem:[%s4625_s3 + $0xf8] sm:$0xff] }
 0x167   : > { %568 = vperm.xlu0 %3273, %v2846_v57  }
 0x168   : > { %573 = vperm.xlu1 %3274, %v2847_v59  }
 0x16b   : > { %578 = vperm.xlu0 %3273, %v2848_v60  }
 0x16c   : > { %616 = vperm.xlu1 %3274, %v2851_v61  }
 0x16f   : > { %621 = vperm.xlu0 %3273, %v2852_v63  }
 0x170   : > { %626 = vperm.xlu1 %3274, %v2853_v0  }
 0x173   : > { %631 = vperm.xlu0 %3273, %v2854_v9  }
 0x174   : > { %686 = vperm.xlu1 %3274, %v2857_v11  }
 0x177   : > { %691 = vperm.xlu0 %3273, %v2858_v12  }
 0x178   : > { %696 = vperm.xlu1 %3274, %v2859_v13  }
 0x17b   : > { %701 = vperm.xlu0 %3273, %v2860_v22  }
 0x17c   : > { %739 = vperm.xlu1 %3274, %v2863_v27  }
 0x17f   : > { %744 = vperm.xlu0 %3273, %v2864_v30  }
 0x180   : > { %749 = vperm.xlu1 %3274, %v2865_v31  }
 0x183   : > { %754 = vperm.xlu0 %3273, %v2866_v32  }
 0x184   : > { %792 = vperm.xlu1 %3274, %v2869_v36  }
 0x186   : > { %v1626_v46 = vpop.xlane.xlu1 %1625  ;;  %v1638_v47 = vpop.xlane.xlu0 %1637 }
 0x187   : > { %v1716_v48 = vsub.f32 %v3618_v17, %v1626_v46  ;;  %797 = vperm.xlu0 %3273, %v2870_v44   ;;  %v1720_v57 = vsub.f32 %v3620_v18, %v1638_v47 }
 0x188   : > { %802 = vperm.xlu1 %3274, %v2871_v45  }
 0x189   : > { %v1750_v59 = vmul.f32 1.442695, %v1716_v48  ;;  %v1758_v11 = vmul.f32 1.442695, %v1720_v57 }
 0x18a   : > { %v1629_v60 = vpop.xlane.xlu1 %1628  ;;  %v1620_v61 = vpop.xlane.xlu0 %1619 }
 0x18b   : > { %v1717_v63 = vsub.f32 %v3630_v23, %v1629_v60  ;;  %v1714_v0 = vsub.f32 %v3622_v19, %v1620_v61  ;;  %3307 = vpow2.f32 %v1750_v59 }
 0x18c   : > { %807 = vperm.xlu1 %3274, %v2872_v52  }
 0x18d   : > { %v1752_v9 = vmul.f32 1.442695, %v1717_v63  ;;  %v1746_v27 = vmul.f32 1.442695, %v1714_v0 }
 0x18e   : > { %v1641_v17 = vpop.xlane.xlu1 %1640  ;;  %v1632_v12 = vpop.xlane.xlu0 %1631 }
 0x18f   : > { %3309 = vpow2.f32 %v1752_v9  ;;  %v1721_v13 = vsub.f32 %v3632_v24, %v1641_v17  ;;  %v1718_v22 = vsub.f32 %v3626_v21, %v1632_v12 }
 0x190   : > { %3311 = vpow2.f32 %v1758_v11 }
 0x191   : > { %v1760_v18 = vmul.f32 1.442695, %v1721_v13  ;;  %v1754_v30 = vmul.f32 1.442695, %v1718_v22 }
 0x192   : > { %v1635_v31 = vpop.xlane.xlu1 %1634  ;;  %v1623_v32 = vpop.xlane.xlu0 %1622 }
 0x193   : > { %3313 = vpow2.f32 %v1760_v18  ;;  %v1719_v23 = vsub.f32 %v3636_v26, %v1635_v31  ;;  %v1715_v19 = vsub.f32 %v3634_v25, %v1623_v32 }
 0x194   : > { %3315 = vpow2.f32 %v1746_v27 }
 0x195   : > { %v1756_v36 = vmul.f32 1.442695, %v1719_v23  ;;  %3317 = vpow2.f32 %v1754_v30  ;;  %v1748_v44 = vmul.f32 1.442695, %v1715_v19  ;;  %v3870_v24 = vpop.eup %3307 }
 0x196   : > { %v1650_v45 = vpop.xlane.xlu0 %1649 }
 0x197   : > { %3319 = vpow2.f32 %v1756_v36  ;;  %v1724_v21 = vsub.f32 %v3650_v33, %v1650_v45 }
 0x198   : > { %3321 = vpow2.f32 %v1748_v44  ;;  %v1653_v46 = vpop.xlane.xlu1 %1652 }
 0x199   : > { %v3873_v47 = vpop.eup %3309  ;;  %v1725_v48 = vsub.f32 %v3660_v38, %v1653_v46  ;;  %v1766_v26 = vmul.f32 1.442695, %v1724_v21 }
 0x19a   : > { %v1939_v25 = vpack.c.bf16 %v3873_v47, %v3870_v24  ;;  %v1662_v57 = vpop.xlane.xlu0 %1661  ;;  %v3878_v59 = vpop.eup %3311 }
 0x19b   : > { %v1768_v52 = vmul.f32 1.442695, %v1725_v48  ;;  %3323 = vpow2.f32 %v1766_v26  ;;  %v1728_v60 = vsub.f32 %v3654_v35, %v1662_v57 }
 0x19c   : > { %v1665_v61 = vpop.xlane.xlu1 %1664 }
 0x19d   : > { %v3314_v63 = vpop.eup %3313  ;;  %3325 = vpow2.f32 %v1768_v52  ;;  %v1729_v33 = vsub.f32 %v3664_v40, %v1665_v61  ;;  %v1774_v0 = vmul.f32 1.442695, %v1728_v60 }
 0x19e   : > { %v1941_v9 = vpack.c.bf16 %v3314_v63, %v3878_v59  ;;  %v3883_v38 = vpop.eup %3315  ;;  %v1644_v17 = vpop.xlane.xlu0 %1643  ;;  %v1831_v61 = vsel %vm1617_vm1, %v3314_v63, 0.0 }
 0x19f   : > { %v1776_v11 = vmul.f32 1.442695, %v1729_v33  ;;  %v3885_v12 = vpop.eup %3317  ;;  %3327 = vpow2.f32 %v1774_v0  ;;  %v1722_v13 = vsub.f32 %v3652_v34, %v1644_v17 }
 0x1a0   : > { %v1647_v22 = vpop.xlane.xlu1 %1646 }
 0x1a1   : > { %v3888_v27 = vpop.eup %3319  ;;  %3329 = vpow2.f32 %v1776_v11  ;;  %v1723_v35 = vsub.f32 %v3662_v39, %v1647_v22  ;;  %v1762_v40 = vmul.f32 1.442695, %v1722_v13 }
 0x1a2   : > { %v3891_v18 = vpop.eup %3321  ;;  %v1940_v30 = vpack.c.bf16 %v3888_v27, %v3885_v12  ;;  %v1656_v23 = vpop.xlane.xlu0 %1655 }
 0x1a3   : > { %v1764_v31 = vmul.f32 1.442695, %v1723_v35  ;;  %v1938_v32 = vpack.c.bf16 %v3891_v18, %v3883_v38  ;;  %3331 = vpow2.f32 %v1762_v40  ;;  %v1726_v34 = vsub.f32 %v3658_v37, %v1656_v23 }
 0x1a4   : > { %v1659_v19 = vpop.xlane.xlu1 %1658  ;;  %v1828_v37 = vsel %vm1617_vm1, %v3878_v59, 0.0  ;;  %v1816_v35 = vsel %vm1617_vm1, %v3870_v24, 0.0  ;;  %v1825_v24 = vsel %vm1617_vm1, %v3888_v27, 0.0 }
 0x1a5   : > { %3333 = vpow2.f32 %v1764_v31  ;;  %3182 = vmatprep.mubr.msk.bf16.mxu0 %vm1617_vm1, %v1938_v32  ;;  %v1727_v39 = vsub.f32 %v3668_v42, %v1659_v19  ;;  %v3900_v36 = vpop.eup %3323  ;;  %v1770_v44 = vmul.f32 1.442695, %v1726_v34  ;;  %v1822_v32 = vsel %vm1617_vm1, %v3885_v12, 0.0 }
 0x1a6   : > { %3183 = vmatmul.mubr.msk.bf16.vlgmr.msra.gmra.mrb[16].mxu0 %vm1617_vm1, %v1939_v25  ;;  %v1674_v46 = vpop.xlane.xlu0 %1673  ;;  %1829 = vadd.xlane.f32.xlu0 %v1828_v37 }
 0x1a7   : > { %v3903_v45 = vpop.eup %3325  ;;  %v1772_v21 = vmul.f32 1.442695, %v1727_v39  ;;  %3195 = vmatpush3.bf16.msra.mxu0 %v3614_v15  ;;  %3198 = vmatprep.mubr.msk.bf16.mxu0 %vm1617_vm1, %v1940_v30  ;;  %3335 = vpow2.f32 %v1770_v44  ;;  %v1732_v42 = vsub.f32 %v3682_v49, %v1674_v46  ;;  %v335_v39 = vlaneseq }
 0x1a8   : > { %3196 = vmatprep.subr.bf16.mxu0 %v3801_v62  ;;  %v1677_v48 = vpop.xlane.xlu1 %1676  ;;  %v1943_v26 = vpack.c.bf16 %v3903_v45, %v3900_v36 }
 0x1a9   : > { %3337 = vpow2.f32 %v1772_v21  ;;  %v1733_v25 = vsub.f32 %v3692_v54, %v1677_v48  ;;  %v3914_v15 = vpop.eup %3327  ;;  %v1782_v52 = vmul.f32 1.442695, %v1732_v42  ;;  %v1813_v21 = vsel %vm1617_vm1, %v3891_v18, 0.0 }
 0x1aa   : > { %v1686_v59 = vpop.xlane.xlu0 %1685  ;;  %1832 = vadd.xlane.f32.xlu0 %v1831_v61  ;;  %v1810_v42 = vsel %vm1617_vm1, %v3883_v38, 0.0 }
 0x1ab   : > { %v3916_v57 = vpop.eup %3329  ;;  %v1784_v60 = vmul.f32 1.442695, %v1733_v25  ;;  %3197 = vmatpush3.bf16.msra.mxu0 %v3801_v62  ;;  %3339 = vpow2.f32 %v1782_v52  ;;  %v1736_v49 = vsub.f32 %v3686_v51, %v1686_v59  ;;  %v1819_v51 = vsel %vm1617_vm1, %v3873_v47, 0.0  ;;  %v3033_v52 = vld [vmem:[%s3553_s10 + $0x10] sm:$0xff]  }
 0x1ac   : > { %3210 = vmatprep.subr.bf16.mxu0 %v3825_v20  ;;  %v1689_v33 = vpop.xlane.xlu1 %1688  ;;  %v1945_v54 = vpack.c.bf16 %v3916_v57, %v3914_v15 }
 0x1ad   : > { %3341 = vpow2.f32 %v1784_v60  ;;  %v1737_v0 = vsub.f32 %v3696_v56, %v1689_v33  ;;  %v3925_v11 = vpop.eup %3331  ;;  %v1790_v17 = vmul.f32 1.442695, %v1736_v49  ;;  %v3978_v60 = vshrl.u32 %v335_v39, 7 }
 0x1ae   : > { %3199 = vmatmul.mubr.msk.bf16.vlgmr.msra.gmra.mrb[20].mxu0 %vm1617_vm1, %v1941_v9  ;;  %v1668_v13 = vpop.xlane.xlu0 %1667  ;;  %1820 = vadd.xlane.f32.xlu0 %v1819_v51 }
 0x1af   : > { %v3928_v62 = vpop.eup %3333  ;;  %v1792_v63 = vmul.f32 1.442695, %v1737_v0  ;;  %3211 = vmatpush3.bf16.msra.mxu0 %v3825_v20  ;;  %3343 = vpow2.f32 %v1790_v17  ;;  %v1730_v22 = vsub.f32 %v3684_v50, %v1668_v13  ;;  %v1840_v0 = vsel %vm1617_vm1, %v3900_v36, 0.0  ;;  %v3034_v13 = vld [vmem:[%s3553_s10 + $0x18] sm:$0xff]  }
 0x1b0   : > { %3212 = vmatprep.subr.bf16.mxu0 %v3835_v29  ;;  %v1671_v56 = vpop.xlane.xlu1 %1670  ;;  %v1942_v9 = vpack.c.bf16 %v3928_v62, %v3925_v11  ;;  %1817 = vadd.xlane.f32.xlu1 %v1816_v35  ;;  %vm337_vm2 = vcmp.lt.s32.totalorder %v3978_v60, 5  ;;  %vm405_vm3 = vcmp.lt.s32.totalorder %v3978_v60, 4  ;;  %vm475_vm4 = vcmp.lt.s32.totalorder %v3978_v60, 3 }
 0x1b1   : > { %3345 = vpow2.f32 %v1792_v63  ;;  %v1731_v20 = vsub.f32 %v3694_v55, %v1671_v56  ;;  %v3940_v40 = vpop.eup %3335  ;;  %v1778_v47 = vmul.f32 1.442695, %v1730_v22  ;;  %v3032_v63 = vld [vmem:[%s3553_s10 + $0x8] sm:$0xff]   ;;  %v3992_v22 = vunpack.c.l.bf16 %v3033_v52 }
 0x1b2   : > { %3214 = vmatprep.mubr.msk.bf16.mxu0 %vm1617_vm1, %v1942_v9  ;;  %v1680_v31 = vpop.xlane.xlu0 %1679  ;;  %1826 = vadd.xlane.f32.xlu0 %v1825_v24  ;;  %vm545_vm5 = vcmp.lt.s32.totalorder %v3978_v60, 1  ;;  %vm668_vm6 = vcmp.lt.s32.totalorder %v3978_v60, 7 }
 0x1b3   : > { %v3943_v30 = vpop.eup %3337  ;;  %v1780_v50 = vmul.f32 1.442695, %v1731_v20  ;;  %3213 = vmatpush3.bf16.msra.mxu0 %v3835_v29  ;;  %3347 = vpow2.f32 %v1778_v47  ;;  %v1734_v55 = vsub.f32 %v3690_v53, %v1680_v31  ;;  %v4007_v31 = vunpack.c.l.bf16 %v3034_v13 }
 0x1b4   : > { %3226 = vmatprep.subr.bf16.mxu0 %v3851_v43  ;;  %v1683_v23 = vpop.xlane.xlu1 %1682  ;;  %v1944_v34 = vpack.c.bf16 %v3943_v30, %v3940_v40  ;;  %1823 = vadd.xlane.f32.xlu1 %v1822_v32 }
 0x1b5   : > { %3349 = vpow2.f32 %v1780_v50  ;;  %v1735_v29 = vsub.f32 %v3700_v58, %v1683_v23  ;;  %v3955_v19 = vpop.eup %3339  ;;  %v1786_v27 = vmul.f32 1.442695, %v1734_v55  ;;  %v2953_v58 = vld [vmem:[%s3553_s10] sm:$0xff]   ;;  %v4005_v50 = vunpack.c.l.bf16 %v3032_v63 }
 0x1b6   : > { %3215 = vmatmul.mubr.msk.bf16.vlgmr.msra.gmra.mrb[24].mxu0 %vm1617_vm1, %v1943_v26  ;;  %v1698_v12 = vpop.xlane.xlu0 %1697  ;;  %1814 = vadd.xlane.f32.xlu0 %v1813_v21  ;;  %v3973_v25 = vunpack.c.l.bf16 %v2953_v58  ;;  %v1852_v55 = vsel %vm1617_vm1, %v3914_v15, 0.0  ;;  %v2832_v15 = vld [vmem:[%s4626_s4] ss:$0 sm:$0xff] }
 0x1b7   : > { %v3958_v53 = vpop.eup %3341  ;;  %v1788_v44 = vmul.f32 1.442695, %v1735_v29  ;;  %3227 = vmatpush3.bf16.msra.mxu0 %v3851_v43  ;;  %3230 = vmatprep.mubr.msk.bf16.mxu0 %vm1617_vm1, %v1944_v34  ;;  %3351 = vpow2.f32 %v1786_v27  ;;  %v1740_v46 = vsub.f32 %v3714_v1, %v1698_v12  ;;  %v3975_v1 = vunpack.c.h.bf16 %v2953_v58 }
 0x1b8   : > { %v1701_v37 = vpop.xlane.xlu1 %1700  ;;  %v1947_v48 = vpack.c.bf16 %v3958_v53, %v3955_v19  ;;  %1811 = vadd.xlane.f32.xlu1 %v1810_v42  ;;  %v327_v35 = vrot.slane %v3973_v25, 3  ;;  %v4015_v29 = vunpack.c.h.bf16 %v3032_v63  ;;  %v4017_v27 = vunpack.c.h.bf16 %v3034_v13 }
 0x1b9   : > { %3353 = vpow2.f32 %v1788_v44  ;;  %v1741_v43 = vsub.f32 %v3724_v6, %v1701_v37  ;;  %v3971_v26 = vpop.eup %3343  ;;  %v1798_v18 = vmul.f32 1.442695, %v1740_v46  ;;  %v1843_v6 = vsel %vm1617_vm1, %v3903_v45, 0.0 }
 0x1ba   : > { %v1710_v61 = vpop.xlane.xlu0 %1709  ;;  %1844 = vadd.xlane.f32.xlu0 %v1843_v6  ;;  %v3994_v45 = vunpack.c.h.bf16 %v3033_v52  ;;  %v329_v36 = vrot.slane %v3975_v1, 3  ;;  %v1837_v46 = vsel %vm1617_vm1, %v3928_v62, 0.0  ;;  %v331_v42 = vrot.slane %v4005_v50, 3 }
 0x1bb   : > { %v3980_v38 = vpop.eup %3345  ;;  %v1800_v59 = vmul.f32 1.442695, %v1741_v43  ;;  %3355 = vpow2.f32 %v1798_v18  ;;  %v1744_v49 = vsub.f32 %v3718_v3, %v1710_v61  ;;  %v332_v43 = vrot.slane %v4007_v31, 3 }
 0x1bc   : > { %v1713_v33 = vpop.xlane.xlu1 %1712  ;;  %v1949_v17 = vpack.c.bf16 %v3980_v38, %v3971_v26  ;;  %1841 = vadd.xlane.f32.xlu1 %v1840_v0  ;;  %v330_v12 = vrot.slane %v3994_v45, 3  ;;  %v1834_v52 = vsel %vm1617_vm1, %v3925_v11, 0.0  ;;  %v333_v61 = vrot.slane %v4015_v29, 3 }
 0x1bd   : > { %3357 = vpow2.f32 %v1800_v59  ;;  %v1745_v51 = vsub.f32 %v3728_v8, %v1713_v33  ;;  %v3996_v56 = vpop.eup %3347  ;;  %v1806_v3 = vmul.f32 1.442695, %v1744_v49  ;;  %v1855_v8 = vsel %vm1617_vm1, %v3916_v57, 0.0 }
 0x1be   : > { %v1692_v47 = vpop.xlane.xlu0 %1691  ;;  %1856 = vadd.xlane.f32.xlu0 %v1855_v8  ;;  %v334_v6 = vrot.slane %v4017_v27, 3  ;;  %v397_v11 = vrot.slane %v3973_v25, 4  ;;  %v398_v49 = vrot.slane %v3992_v22, 4  ;;  %v403_v33 = vrot.slane %v4015_v29, 4 }
 0x1bf   : > { %v4001_v9 = vpop.eup %3349  ;;  %v1808_v20 = vmul.f32 1.442695, %v1745_v51  ;;  %3359 = vpow2.f32 %v1806_v3  ;;  %v1738_v24 = vsub.f32 %v3716_v2, %v1692_v47  ;;  %v328_v2 = vrot.slane %v3992_v22, 3 }
 0x1c0   : > { %v1695_v23 = vpop.xlane.xlu1 %1694  ;;  %v1946_v32 = vpack.c.bf16 %v4001_v9, %v3996_v56  ;;  %1853 = vadd.xlane.f32.xlu1 %v1852_v55  ;;  %v404_v51 = vrot.slane %v4017_v27, 4  ;;  %v4081_v47 = vsel %vm337_vm2, %v330_v12, %v332_v43 }
 0x1c1   : > { %3361 = vpow2.f32 %v1808_v20  ;;  %v1739_v34 = vsub.f32 %v3726_v7, %v1695_v23  ;;  %v4019_v39 = vpop.eup %3351  ;;  %v1794_v44 = vmul.f32 1.442695, %v1738_v24  ;;  %v4030_v7 = vsel %vm337_vm2, %v327_v35, %v329_v36 }
 0x1c2   : > { %3190 = vmatprep.mubr.msk.bf16.mxu1 %vm1617_vm1, %v1946_v32  ;;  %v1704_v37 = vpop.xlane.xlu0 %1703  ;;  %1838 = vadd.xlane.f32.xlu0 %v1837_v46  ;;  %v4066_v20 = vsel %vm337_vm2, %v328_v2, %v330_v12  ;;  %v4093_v55 = vsel %vm337_vm2, %v334_v6, %v328_v2  ;;  %v399_v23 = vrot.slane %v3975_v1, 4  ;;  %v400_v2 = vrot.slane %v3994_v45, 4 }
 0x1c3   : > { %v4032_v21 = vpop.eup %3353  ;;  %v1796_v58 = vmul.f32 1.442695, %v1739_v34  ;;  %3191 = vmatmul.mubr.msk.bf16.vlgmr.msra.gmra.mrb[16].mxu1 %vm1617_vm1, %v1947_v48  ;;  %3363 = vpow2.f32 %v1794_v44  ;;  %v1742_v18 = vsub.f32 %v3722_v5, %v1704_v37  ;;  %v1879_v34 = vsel %vm1617_vm1, %v3980_v38, 0.0 }
 0x1c4   : > { %3203 = vmatpush3.bf16.msra.mxu1 %v3612_v14  ;;  %v1707_v59 = vpop.xlane.xlu1 %1706  ;;  %v1948_v62 = vpack.c.bf16 %v4032_v21, %v4019_v39  ;;  %1835 = vadd.xlane.f32.xlu1 %v1834_v52  ;;  %v4119_v44 = vsel %vm405_vm3, %v404_v51, %v398_v49  ;;  %v402_v12 = vrot.slane %v4007_v31, 4  ;;  %v4126_v38 = vsel %vm337_vm2, %v331_v42, %v333_v61 }
 0x1c5   : > { %3365 = vpow2.f32 %v1796_v58  ;;  %3204 = vmatprep.subr.bf16.mxu1 %v3809_v4  ;;  %v1743_v48 = vsub.f32 %v3732_v10, %v1707_v59  ;;  %v4049_v5 = vpop.eup %3355  ;;  %v1802_v14 = vmul.f32 1.442695, %v1742_v18  ;;  %v1849_v10 = vsel %vm1617_vm1, %v3943_v30, 0.0  ;;  %4638 = vst [vmem:[#allocation3_spill] sm:$0xff] %v4119_v44 }
 0x1c6   : > { %3206 = vmatprep.mubr.msk.bf16.mxu1 %vm1617_vm1, %v1948_v62  ;;  %v2531_v13 = vpop.permute.xlu0 %2530  ;;  %1850 = vadd.xlane.f32.xlu0 %v1849_v10  ;;  %v4072_v30 = vsel %vm337_vm2, %v329_v36, %v331_v42  ;;  %v4087_v36 = vsel %vm337_vm2, %v333_v61, %v327_v35  ;;  %v401_v35 = vrot.slane %v4005_v50, 4  ;;  %v467_v37 = vrot.slane %v3973_v25, 5 }
 0x1c7   : > { %v4055_v0 = vpop.eup %3357  ;;  %v1804_v63 = vmul.f32 1.442695, %v1743_v48  ;;  %3367 = vpow2.f32 %v1802_v14  ;;  %3228 = vmatprep.subr.bf16.mxu0 %v2531_v13  ;;  %v468_v42 = vrot.slane %v3992_v22, 5  ;;  %v4630_v18 = vrot.slane %v4017_v27, 5 }
 0x1c8   : > { %3205 = vmatpush3.bf16.msra.mxu1 %v3809_v4  ;;  %v4062_v3 = vpop.permute.xlu1 %2601  ;;  %v1951_v8 = vpack.c.bf16 %v4055_v0, %v4049_v5  ;;  %v1846_v4 = vsel %vm1617_vm1, %v3940_v40, 0.0  ;;  %3229 = vmatpush3.bf16.msra.mxu0 %v2531_v13  ;;  %v4101_v40 = vsel %vm405_vm3, %v403_v33, %v397_v11  ;;  %v4152_v57 = vsel %vm405_vm3, %v399_v23, %v401_v35 }
 0x1c9   : > { %3369 = vpow2.f32 %v1804_v63  ;;  %3218 = vmatprep.subr.bf16.mxu1 %v3823_v16  ;;  %v4089_v24 = vpop.eup %3359  ;;  %1847 = vadd.xlane.f32.xlu1 %v1846_v4  ;;  %4637 = vst [vmem:[#allocation2_spill] sm:$0xff] %v4101_v40  ;;  %v1867_v62 = vsel %vm1617_vm1, %v3958_v53, 0.0  ;;  %v4163_v61 = vsel %vm405_vm3, %v400_v2, %v402_v12  ;;  %v4629_v14 = vrot.slane %v4007_v31, 5 }
 0x1ca   : > { %1880 = vadd.xlane.f32.xlu0 %v1879_v34  ;;  %v4174_v53 = vsel %vm405_vm3, %v397_v11, %v399_v23  ;;  %v4180_v13 = vsel %vm405_vm3, %v398_v49, %v400_v2  ;;  %v4195_v11 = vsel %vm475_vm4, %v4630_v18, %v468_v42  ;;  %v4207_v23 = vsel %vm405_vm3, %v401_v35, %v403_v33 }
 0x1cb   : > { %v4105_v32 = vpop.eup %3361  ;;  %3207 = vmatmul.mubr.msk.bf16.vlgmr.msra.gmra.mrb[20].mxu1 %vm1617_vm1, %v1949_v17  ;;  %v4130_v17 = vsel %vm337_vm2, %v332_v43, %v334_v6  ;;  %3231 = vmatmul.mubr.msk.bf16.vlgmr.msra.gmra.mrb[28].mxu0 %vm1617_vm1, %v1945_v54  ;;  %v4632_v43 = vrot.slane %v4015_v29, 5  ;;  %v469_v54 = vrot.slane %v3975_v1, 5  ;;  %v470_v6 = vrot.slane %v3994_v45, 5  ;;  %4640 = vst [vmem:[#allocation5_spill] sm:$0xff] %v4195_v11 }
 0x1cc   : > { %3219 = vmatpush3.bf16.msra.mxu1 %v3823_v16  ;;  %v359_v58 = vpop.permute.xlu1 %358  ;;  %v1876_v16 = vsel %vm1617_vm1, %v3971_v26, 0.0  ;;  %v4631_v26 = vrot.slane %v4005_v50, 5  ;;  %v4213_v2 = vsel %vm405_vm3, %v402_v12, %v404_v51 }
 0x1cd   : > { %3220 = vmatprep.subr.bf16.mxu1 %v3833_v28  ;;  %v4145_v52 = vpop.eup %3363  ;;  %1877 = vadd.xlane.f32.xlu1 %v1876_v16  ;;  %v4189_v34 = vsel %vm475_vm4, %v4632_v43, %v467_v37  ;;  %v4233_v51 = vsel %vm475_vm4, %v470_v6, %v4629_v14  ;;  %v4237_v35 = vsel %vm475_vm4, %v467_v37, %v469_v54  ;;  %v1870_v37 = vsel %vm1617_vm1, %v4019_v39, 0.0 }
 0x1ce   : > { %v354_v48 = vpop.permute.xlu0 %353  ;;  %1868 = vadd.xlane.f32.xlu0 %v1867_v62  ;;  %4639 = vst [vmem:[#allocation4_spill] sm:$0xff] %v4189_v34  ;;  %v4219_v16 = vsel %vm475_vm4, %v469_v54, %v4631_v26 }
 0x1cf   : > { %v4157_v59 = vpop.eup %3365  ;;  %v377_v4 = vmul.f32 %v2832_v15, %v354_v48  ;;  %v378_v48 = vmul.f32 %v2832_v15, %v359_v58 }
 0x1d0   : > { %3221 = vmatpush3.bf16.msra.mxu1 %v3833_v28  ;;  %v364_v63 = vpop.permute.xlu1 %363  ;;  %v1950_v10 = vpack.c.bf16 %v4157_v59, %v4145_v52  ;;  %v1864_v28 = vsel %vm1617_vm1, %v3955_v19, 0.0  ;;  %v2838_v19 = vld [vmem:[%s4626_s4 + $0x1] ss:$0 sm:$0xff] }
 0x1d1   : > { %3234 = vmatprep.subr.bf16.mxu1 %v3849_v41  ;;  %v4197_v49 = vpop.eup %3367  ;;  %1865 = vadd.xlane.f32.xlu1 %v1864_v28  ;;  %v379_v12 = vmul.f32 %v2832_v15, %v364_v63  ;;  %v381_v28 = vmul.f32 %v377_v4, %v4087_v36  ;;  %v385_v14 = vmul.f32 %v377_v4, %v4093_v55 }
 0x1d2   : > { %3222 = vmatprep.mubr.msk.bf16.mxu1 %vm1617_vm1, %v1950_v10  ;;  %v1873_v10 = vsel %vm1617_vm1, %v4032_v21, 0.0  ;;  %v369_v33 = vpop.permute.xlu0 %368  ;;  %v382_v4 = vmul.f32 %v378_v48, %v4030_v7 }
 0x1d3   : > { %v4221_v62 = vpop.eup %3369  ;;  %3223 = vmatmul.mubr.msk.bf16.vlgmr.msra.gmra.mrb[24].mxu1 %vm1617_vm1, %v1951_v8  ;;  %1874 = vadd.xlane.f32.xlu0 %v1873_v10  ;;  %v4244_v8 = vsel %vm475_vm4, %v468_v42, %v470_v6  ;;  %v387_v42 = vmul.f32 %v379_v12, %v4081_v47 }
 0x1d4   : > { %3235 = vmatpush3.bf16.msra.mxu1 %v3849_v41  ;;  %v424_v21 = vpop.permute.xlu1 %423  ;;  %v1952_v58 = vpack.c.bf16 %v4221_v62, %v4197_v49  ;;  %v1861_v41 = vsel %vm1617_vm1, %v4001_v9, 0.0  ;;  %v383_v9 = vmul.f32 %v379_v12, %v4072_v30 }
 0x1d5   : > { %v447_v54 = vmul.f32 %v2838_v19, %v424_v21  ;;  %3236 = vmatprep.subr.bf16.mxu1 %v4062_v3  ;;  %1871 = vadd.xlane.f32.xlu1 %v1870_v37  ;;  %v380_v21 = vmul.f32 %v2832_v15, %v369_v33  ;;  %v386_v37 = vmul.f32 %v378_v48, %v4066_v20  ;;  %v2844_v33 = vld [vmem:[%s4626_s4 + $0x2] ss:$0 sm:$0xff] }
 0x1d6   : > { %3238 = vmatprep.mubr.msk.bf16.mxu1 %vm1617_vm1, %v1952_v58  ;;  %v429_v18 = vpop.permute.xlu0 %428  ;;  %v1858_v58 = vsel %vm1617_vm1, %v3996_v56, 0.0 }
 0x1d7   : > { %v451_v10 = vmul.f32 %v447_v54, %v4101_v40  ;;  %v455_v39 = vmul.f32 %v447_v54, %v4119_v44  ;;  %1862 = vadd.xlane.f32.xlu0 %v1861_v41  ;;  %v448_v43 = vmul.f32 %v2838_v19, %v429_v18 }
 0x1d8   : > { %3237 = vmatpush3.bf16.msra.mxu1 %v4062_v3  ;;  %v434_v26 = vpop.permute.xlu1 %433  ;;  %v384_v3 = vmul.f32 %v380_v21, %v4126_v38 }
 0x1d9   : > { %v459_v6 = vadd.f32 %v451_v10, %v381_v28  ;;  %v463_v63 = vadd.f32 %v455_v39, %v385_v14  ;;  %v449_v46 = vmul.f32 %v2838_v19, %v434_v26  ;;  %1859 = vadd.xlane.f32.xlu1 %v1858_v58  ;;  %v452_v15 = vmul.f32 %v448_v43, %v4174_v53 }
 0x1da   : > { %v456_v48 = vmul.f32 %v448_v43, %v4180_v13  ;;  %v1891_v26 = vsel %vm1617_vm1, %v4055_v0, 0.0  ;;  %v4641_v43 = vpack.c.bf16 %v4105_v32, %v4089_v24  ;;  %v439_v12 = vpop.permute.xlu0 %438  ;;  %v388_v28 = vmul.f32 %v380_v21, %v4130_v17 }
 0x1db   : > { %v453_v18 = vmul.f32 %v449_v46, %v4152_v57  ;;  %v457_v14 = vmul.f32 %v449_v46, %v4163_v61  ;;  %v460_v54 = vadd.f32 %v452_v15, %v382_v4  ;;  %1892 = vadd.xlane.f32.xlu0 %v1891_v26  ;;  %v450_v39 = vmul.f32 %v2838_v19, %v439_v12 }
 0x1dc   : > { %3239 = vmatmul.mubr.msk.bf16.vlgmr.msra.gmra.mrb[28].mxu1 %vm1617_vm1, %v4641_v43  ;;  %v464_v41 = vadd.f32 %v456_v48, %v386_v37  ;;  %v494_v10 = vpop.permute.xlu1 %493  ;;  %v1888_v46 = vsel %vm1617_vm1, %v4049_v5, 0.0  ;;  %v4642_v43 = vrot.slane %v3973_v25, 7  ;;  %v4643_v21 = vrot.slane %v4015_v29, 7 }
 0x1dd   : > { %v461_v58 = vadd.f32 %v453_v18, %v383_v9  ;;  %v465_v56 = vadd.f32 %v457_v14, %v387_v42  ;;  %v517_v44 = vmul.f32 %v2844_v33, %v494_v10  ;;  %1889 = vadd.xlane.f32.xlu1 %v1888_v46  ;;  %v454_v0 = vmul.f32 %v450_v39, %v4207_v23 }
 0x1de   : > { %v458_v40 = vmul.f32 %v450_v39, %v4213_v2  ;;  %v552_v4 = vsel %vm545_vm5, %v4643_v21, %v4642_v43  ;;  %v4644_v19 = vrot.slane %v3992_v22, 7  ;;  %v4645_v42 = vrot.slane %v4017_v27, 7  ;;  %v499_v48 = vpop.permute.xlu0 %498 }
 0x1df   : > { %v521_v37 = vmul.f32 %v517_v44, %v4189_v34  ;;  %v525_v9 = vmul.f32 %v517_v44, %v4195_v11  ;;  %v1903_v15 = vsel %vm1617_vm1, %v4105_v32, 0.0  ;;  %v4646_v18 = vrot.slane %v4015_v29, 5 }
 0x1e0   : > { %v553_v5 = vsel %vm545_vm5, %v4645_v42, %v4644_v19  ;;  %v4647_v14 = vrot.slane %v4005_v50, 5  ;;  %v462_v12 = vadd.f32 %v454_v0, %v384_v3  ;;  %v466_v10 = vadd.f32 %v458_v40, %v388_v28  ;;  %1904 = vadd.xlane.f32.xlu0 %v1903_v15  ;;  %v504_v39 = vpop.permute.xlu1 %503  ;;  %v2850_v28 = vld [vmem:[%s4626_s4 + $0x3] ss:$0 sm:$0xff] }
 0x1e1   : > { %v518_v46 = vmul.f32 %v2844_v33, %v499_v48  ;;  %v4648_v43 = vrot.slane %v4017_v27, 5  ;;  %v4649_v44 = vrot.slane %v4007_v31, 5  ;;  %v529_v21 = vadd.f32 %v521_v37, %v459_v6 }
 0x1e2   : > { %v4309_v26 = vsel %vm475_vm4, %v4647_v14, %v4646_v18  ;;  %v533_v19 = vadd.f32 %v525_v9, %v463_v63  ;;  %v1900_v42 = vsel %vm1617_vm1, %v4089_v24, 0.0  ;;  %v519_v18 = vmul.f32 %v2844_v33, %v504_v39  ;;  %v509_v37 = vpop.permute.xlu0 %508 }
 0x1e3   : > { %v4317_v32 = vsel %vm475_vm4, %v4649_v44, %v4648_v43  ;;  %1901 = vadd.xlane.f32.xlu1 %v1900_v42  ;;  %v522_v40 = vmul.f32 %v518_v46, %v4237_v35  ;;  %v526_v3 = vmul.f32 %v518_v46, %v4244_v8  ;;  %v539_v0 = vrot.slane %v3975_v1, 7 }
 0x1e4   : > { %v541_v15 = vrot.slane %v4005_v50, 7  ;;  %v523_v6 = vmul.f32 %v519_v18, %v4219_v16  ;;  %v527_v63 = vmul.f32 %v519_v18, %v4233_v51  ;;  %v1885_v24 = vsel %vm1617_vm1, %v4157_v59, 0.0  ;;  %v564_v39 = vpop.permute.xlu1 %563 }
 0x1e5   : > { %v540_v9 = vrot.slane %v3994_v45, 7  ;;  %v530_v48 = vadd.f32 %v522_v40, %v460_v54  ;;  %v534_v14 = vadd.f32 %v526_v3, %v464_v41  ;;  %1886 = vadd.xlane.f32.xlu0 %v1885_v24  ;;  %v520_v46 = vmul.f32 %v2844_v33, %v509_v37 }
 0x1e6   : > { %v542_v43 = vrot.slane %v4007_v31, 7  ;;  %v531_v44 = vadd.f32 %v523_v6, %v461_v58  ;;  %v535_v42 = vadd.f32 %v527_v63, %v465_v56  ;;  %v1882_v11 = vsel %vm1617_vm1, %v4145_v52, 0.0  ;;  %v569_v3 = vpop.permute.xlu0 %568 }
 0x1e7   : > { %v587_v34 = vmul.f32 %v2850_v28, %v564_v39  ;;  %1883 = vadd.xlane.f32.xlu1 %v1882_v11  ;;  %v524_v18 = vmul.f32 %v520_v46, %v4309_v26  ;;  %v528_v59 = vmul.f32 %v520_v46, %v4317_v32  ;;  %v548_v54 = vsel %vm545_vm5, %v539_v0, %v541_v15 }
 0x1e8   : > { %v4650_v41 = vrot.slane %v3973_v25, 7  ;;  %v1897_v56 = vsel %vm1617_vm1, %v4221_v62, 0.0  ;;  %v4651_v52 = vrot.slane %v3992_v22, 7  ;;  %v549_v24 = vsel %vm545_vm5, %v540_v9, %v542_v43  ;;  %v574_v37 = vpop.permute.xlu1 %573 }
 0x1e9   : > { %v591_v40 = vmul.f32 %v587_v34, %v552_v4  ;;  %v595_v58 = vmul.f32 %v587_v34, %v553_v5  ;;  %v532_v6 = vadd.f32 %v524_v18, %v462_v12  ;;  %v536_v63 = vadd.f32 %v528_v59, %v466_v10  ;;  %1898 = vadd.xlane.f32.xlu0 %v1897_v56  ;;  %v2856_v12 = vld [vmem:[%s4626_s4 + $0x4] ss:$0 sm:$0xff] }
 0x1ea   : > { %v550_v33 = vsel %vm545_vm5, %v4650_v41, %v539_v0  ;;  %v551_v11 = vsel %vm545_vm5, %v4651_v52, %v540_v9  ;;  %v588_v39 = vmul.f32 %v2850_v28, %v569_v3  ;;  %v1894_v34 = vsel %vm1617_vm1, %v4197_v49, 0.0 }
 0x1eb   : > { %v599_v0 = vadd.f32 %v591_v40, %v529_v21  ;;  %v603_v4 = vadd.f32 %v595_v58, %v533_v19  ;;  %v589_v62 = vmul.f32 %v2850_v28, %v574_v37  ;;  %1895 = vadd.xlane.f32.xlu1 %v1894_v34  ;;  %v4652_v59 = vrot.slane %v4015_v29, 7  ;;  %v579_v19 = vpop.permute.xlu0 %578 }
 0x1ec   : > { %v592_v5 = vmul.f32 %v588_v39, %v550_v33  ;;  %v596_v46 = vmul.f32 %v588_v39, %v551_v11  ;;  %v4653_v21 = vrot.slane %v4017_v27, 7  ;;  %v617_v40 = vpop.permute.xlu1 %616  ;;  %v590_v58 = vmul.f32 %v2850_v28, %v579_v19 }
 0x1ed   : > { %v593_v10 = vmul.f32 %v589_v62, %v548_v54  ;;  %v597_v18 = vmul.f32 %v589_v62, %v549_v24  ;;  %v546_v9 = vsel %vm545_vm5, %v541_v15, %v4652_v59  ;;  %v660_v56 = vrot.slane %v3973_v25, 1 }
 0x1ee   : > { %v547_v49 = vsel %vm545_vm5, %v542_v43, %v4653_v21  ;;  %v600_v41 = vadd.f32 %v592_v5, %v530_v48  ;;  %v604_v33 = vadd.f32 %v596_v46, %v534_v14  ;;  %v640_v11 = vmul.f32 %v2856_v12, %v617_v40 }
 0x1ef   : > { %v601_v52 = vadd.f32 %v593_v10, %v531_v44  ;;  %v605_v54 = vadd.f32 %v597_v18, %v535_v42  ;;  %v662_v3 = vrot.slane %v3975_v1, 1  ;;  %v594_v24 = vmul.f32 %v590_v58, %v546_v9  ;;  %v622_v39 = vpop.permute.xlu0 %621 }
 0x1f0   : > { %v598_v37 = vmul.f32 %v590_v58, %v547_v49  ;;  %v644_v15 = vmul.f32 %v3973_v25, %v640_v11  ;;  %v648_v43 = vmul.f32 %v3992_v22, %v640_v11  ;;  %v661_v48 = vrot.slane %v3992_v22, 1  ;;  %v627_v44 = vpop.permute.xlu1 %626  ;;  %v2862_v22 = vld [vmem:[%s4626_s4 + $0x5] ss:$0 sm:$0xff] }
 0x1f1   : > { %v663_v28 = vrot.slane %v3994_v45, 1  ;;  %v602_v14 = vadd.f32 %v594_v24, %v532_v6  ;;  %v641_v42 = vmul.f32 %v2856_v12, %v622_v39  ;;  %v642_v46 = vmul.f32 %v2856_v12, %v627_v44 }
 0x1f2   : > { %v606_v34 = vadd.f32 %v598_v37, %v536_v63  ;;  %v652_v62 = vadd.f32 %v644_v15, %v599_v0  ;;  %v656_v5 = vadd.f32 %v648_v43, %v603_v4  ;;  %v673_v10 = vsel %vm668_vm6, %v660_v56, %v662_v3 }
 0x1f3   : > { %v645_v18 = vmul.f32 %v3975_v1, %v641_v42  ;;  %v649_v59 = vmul.f32 %v3994_v45, %v641_v42  ;;  %v664_v6 = vrot.slane %v4005_v50, 1  ;;  %v666_v63 = vrot.slane %v4015_v29, 1  ;;  %v632_v21 = vpop.permute.xlu0 %631 }
 0x1f4   : > { %v646_v0 = vmul.f32 %v4005_v50, %v642_v46  ;;  %v650_v4 = vmul.f32 %v4007_v31, %v642_v46  ;;  %v674_v9 = vsel %vm668_vm6, %v661_v48, %v663_v28  ;;  %v665_v1 = vrot.slane %v4007_v31, 1  ;;  %v687_v19 = vpop.permute.xlu1 %686 }
 0x1f5   : > { %v653_v49 = vadd.f32 %v645_v18, %v600_v41  ;;  %v657_v45 = vadd.f32 %v649_v59, %v604_v33  ;;  %v643_v40 = vmul.f32 %v2856_v12, %v632_v21  ;;  %v667_v58 = vrot.slane %v4017_v27, 1 }
 0x1f6   : > { %v654_v11 = vadd.f32 %v646_v0, %v601_v52  ;;  %v658_v24 = vadd.f32 %v650_v4, %v605_v54  ;;  %v710_v37 = vmul.f32 %v2862_v22, %v687_v19  ;;  %v669_v43 = vsel %vm668_vm6, %v664_v6, %v666_v63  ;;  %v2877_v19 = vld [vmem:[%s4625_s3 + $0x110] sm:$0xff] }
 0x1f7   : > { %v647_v15 = vmul.f32 %v4015_v29, %v643_v40  ;;  %v651_v50 = vmul.f32 %v4017_v27, %v643_v40  ;;  %v671_v31 = vsel %vm668_vm6, %v662_v3, %v664_v6  ;;  %v672_v12 = vsel %vm668_vm6, %v663_v28, %v665_v1  ;;  %v692_v41 = vpop.permute.xlu0 %691  ;;  %v2875_v27 = vld [vmem:[%s4625_s3 + $0x100] sm:$0xff]  ;;  %v2876_v6 = vld [vmem:[%s4625_s3 + $0x108] sm:$0xff] }
 0x1f8   : > { %v714_v39 = vmul.f32 %v710_v37, %v673_v10  ;;  %v718_v44 = vmul.f32 %v710_v37, %v674_v9  ;;  %v670_v54 = vsel %vm668_vm6, %v665_v1, %v667_v58  ;;  %v697_v29 = vpop.permute.xlu1 %696  ;;  %v711_v42 = vmul.f32 %v2862_v22, %v692_v41  ;;  %v2868_v28 = vld [vmem:[%s4626_s4 + $0x6] ss:$0 sm:$0xff] }
 0x1f9   : > { %v655_v33 = vadd.f32 %v647_v15, %v602_v14  ;;  %v659_v52 = vadd.f32 %v651_v50, %v606_v34  ;;  %v712_v18 = vmul.f32 %v2862_v22, %v697_v29 }
 0x1fa   : > { %v722_v46 = vadd.f32 %v714_v39, %v652_v62  ;;  %v726_v10 = vadd.f32 %v718_v44, %v656_v5  ;;  %v715_v59 = vmul.f32 %v711_v42, %v671_v31  ;;  %v719_v3 = vmul.f32 %v711_v42, %v672_v12 }
 0x1fb   : > { %v716_v14 = vmul.f32 %v712_v18, %v669_v43  ;;  %v720_v34 = vmul.f32 %v712_v18, %v670_v54  ;;  %v675_v62 = vsel %vm668_vm6, %v666_v63, %v660_v56  ;;  %v676_v5 = vsel %vm668_vm6, %v667_v58, %v661_v48  ;;  %v702_v0 = vpop.permute.xlu0 %701  ;;  %v2878_v48 = vld [vmem:[%s4625_s3 + $0x118] sm:$0xff] }
 0x1fc   : > { %845 = vperm.xlu1 %3274, %v2875_v27   ;;  %v723_v4 = vadd.f32 %v715_v59, %v653_v49  ;;  %v727_v9 = vadd.f32 %v719_v3, %v657_v45  ;;  %v740_v21 = vpop.permute.xlu1 %739  ;;  %v713_v1 = vmul.f32 %v2862_v22, %v702_v0 }
 0x1fd   : > { %v724_v40 = vadd.f32 %v716_v14, %v654_v11  ;;  %v728_v37 = vadd.f32 %v720_v34, %v658_v24  ;;  %v763_v15 = vmul.f32 %v2868_v28, %v740_v21  ;;  %v4654_v21 = vld [vmem:[#allocation2_spill] sm:$0xff] }
 0x1fe   : > { %v717_v25 = vmul.f32 %v713_v1, %v675_v62  ;;  %v721_v50 = vmul.f32 %v713_v1, %v676_v5 }
 0x1ff   : > { %850 = vperm.xlu0 %3273, %v2876_v6   ;;  %v767_v56 = vmul.f32 %v763_v15, %v4030_v7  ;;  %v771_v60 = vmul.f32 %v763_v15, %v4066_v20  ;;  %v745_v22 = vpop.permute.xlu0 %744  ;;  %v2874_v20 = vld [vmem:[%s4626_s4 + $0x7] ss:$0 sm:$0xff] }
 0x200   : > { %855 = vperm.xlu1 %3274, %v2877_v19   ;;  %v725_v63 = vadd.f32 %v717_v25, %v655_v33  ;;  %v729_v49 = vadd.f32 %v721_v50, %v659_v52  ;;  %v750_v45 = vpop.permute.xlu1 %749  ;;  %v764_v58 = vmul.f32 %v2868_v28, %v745_v22  ;;  %v4655_v19 = vld [vmem:[#allocation3_spill] sm:$0xff] }
 0x201   : > { %v775_v11 = vadd.f32 %v767_v56, %v722_v46  ;;  %v779_v24 = vadd.f32 %v771_v60, %v726_v10  ;;  %v765_v43 = vmul.f32 %v2868_v28, %v750_v45 }
 0x202   : > { %v768_v39 = vmul.f32 %v764_v58, %v4072_v30  ;;  %v772_v7 = vmul.f32 %v764_v58, %v4081_v47 }
 0x203   : > { %860 = vperm.xlu0 %3273, %v2878_v48   ;;  %v769_v44 = vmul.f32 %v765_v43, %v4126_v38  ;;  %v773_v31 = vmul.f32 %v765_v43, %v4130_v17  ;;  %v755_v12 = vpop.permute.xlu0 %754 }
 0x204   : > { %v776_v41 = vadd.f32 %v768_v39, %v723_v4  ;;  %v780_v33 = vadd.f32 %v772_v7, %v727_v9  ;;  %v793_v52 = vpop.permute.xlu1 %792  ;;  %v766_v54 = vmul.f32 %v2868_v28, %v755_v12 }
 0x205   : > { %v777_v29 = vadd.f32 %v769_v44, %v724_v40  ;;  %v781_v42 = vadd.f32 %v773_v31, %v728_v37  ;;  %v816_v27 = vmul.f32 %v2874_v20, %v793_v52 }
 0x206   : > { %v770_v30 = vmul.f32 %v766_v54, %v4087_v36  ;;  %v774_v47 = vmul.f32 %v766_v54, %v4093_v55 }
 0x207   : > { %v820_v46 = vmul.f32 %v816_v27, %v4174_v53  ;;  %v824_v10 = vmul.f32 %v816_v27, %v4180_v13  ;;  %v798_v18 = vpop.permute.xlu0 %797 }
 0x208   : > { %v778_v38 = vadd.f32 %v770_v30, %v725_v63  ;;  %v782_v59 = vadd.f32 %v774_v47, %v729_v49  ;;  %v803_v17 = vpop.permute.xlu1 %802  ;;  %v817_v3 = vmul.f32 %v2874_v20, %v798_v18 }
 0x209   : > { %v4433_v14 = vadd.f32 %v820_v46, %v775_v11  ;;  %v4435_v34 = vadd.f32 %v824_v10, %v779_v24  ;;  %v818_v28 = vmul.f32 %v2874_v20, %v803_v17 }
 0x20a   : > { %v821_v6 = vmul.f32 %v817_v3, %v4152_v57  ;;  %v825_v36 = vmul.f32 %v817_v3, %v4163_v61 }
 0x20b   : > { %v822_v55 = vmul.f32 %v818_v28, %v4207_v23  ;;  %v826_v53 = vmul.f32 %v818_v28, %v4213_v2 }
 0x20c   : > { %v4441_v62 = vadd.f32 %v821_v6, %v776_v41  ;;  %v4443_v13 = vadd.f32 %v825_v36, %v780_v33  ;;  %v808_v5 = vpop.permute.xlu1 %807 }
 0x20d   : > { %v4445_v0 = vadd.f32 %v822_v55, %v777_v29  ;;  %v4447_v4 = vadd.f32 %v826_v53, %v781_v42  ;;  %v819_v9 = vmul.f32 %v2874_v20, %v808_v5 }
 0x20f   : > { %v823_v1 = vmul.f32 %v819_v9, %v4654_v21  ;;  %v827_v57 = vmul.f32 %v819_v9, %v4655_v19 }
 0x211   : > { %v4451_v40 = vadd.f32 %v823_v1, %v778_v38  ;;  %v4453_v61 = vadd.f32 %v827_v57, %v782_v59 }
 0x233   : > { %v1830_v23 = vpop.xlane.xlu0 %1829 }
 0x237   : > { %v1833_v2 = vpop.xlane.xlu0 %1832 }
 0x23b   : > { %v1821_v15 = vpop.xlane.xlu0 %1820 }
 0x23d   : > { %v1818_v37 = vpop.xlane.xlu1 %1817 }
 0x23e   : > { %3371 = vrcp.f32 %v1818_v37 }
 0x23f   : > { %v1827_v50 = vpop.xlane.xlu0 %1826 }
 0x241   : > { %v1824_v25 = vpop.xlane.xlu1 %1823 }
 0x243   : > { %v1815_v60 = vpop.xlane.xlu0 %1814 }
 0x245   : > { %v1812_v56 = vpop.xlane.xlu1 %1811 }
 0x246   : > { %3373 = vrcp.f32 %v1812_v56 }
 0x247   : > { %v1845_v22 = vpop.xlane.xlu0 %1844  ;;  %3375 = vrcp.f32 %v1821_v15 }
 0x248   : > { %3377 = vrcp.f32 %v1815_v60  ;;  %v3372_v39 = vpop.eup %3371 }
 0x249   : > { %v1842_v48 = vpop.xlane.xlu1 %1841  ;;  %3379 = vrcp.f32 %v1830_v23 }
 0x24a   : > { %3381 = vrcp.f32 %v1833_v2 }
 0x24b   : > { %v4457_v49 = vpop.xlane.xlu0 %1856  ;;  %3383 = vrcp.f32 %v1824_v25 }
 0x24c   : > { %3385 = vrcp.f32 %v1827_v50 }
 0x24d   : > { %v4455_v63 = vpop.xlane.xlu1 %1853  ;;  %3387 = vrcp.f32 %v1842_v48 }
 0x24e   : > { %3389 = vrcp.f32 %v1845_v22 }
 0x24f   : > { %v1839_v58 = vpop.xlane.xlu0 %1838 }
 0x250   : > { %v3374_v20 = vpop.eup %3373 }
 0x251   : > { %v1836_v45 = vpop.xlane.xlu1 %1835  ;;  %v3376_v41 = vpop.eup %3375 }
 0x252   : > { %v3378_v54 = vpop.eup %3377  ;;  %3391 = vrcp.f32 %v1836_v45 }
 0x253   : > { %v4461_v24 = vpop.xlane.xlu0 %1850  ;;  %v3380_v10 = vpop.eup %3379  ;;  %3393 = vrcp.f32 %v1839_v58 }
 0x254   : > { %v3382_v38 = vpop.eup %3381 }
 0x255   : > { %v3384_v36 = vpop.eup %3383 }
 0x256   : > { %v4459_v11 = vpop.xlane.xlu1 %1847  ;;  %v3386_v53 = vpop.eup %3385 }
 0x257   : > { %v4471_v44 = vpop.xlane.xlu0 %1880  ;;  %v3388_v21 = vpop.eup %3387 }
 0x258   : > { %v3390_v2 = vpop.eup %3389 }
 0x25a   : > { %v4464_v43 = vpop.xlane.xlu1 %1877 }
 0x25b   : > { %v1869_v47 = vpop.xlane.xlu0 %1868 }
 0x25c   : > { %v3392_v56 = vpop.eup %3391 }
 0x25d   : > { %v3394_v60 = vpop.eup %3393 }
 0x25e   : > { %v1866_v30 = vpop.xlane.xlu1 %1865 }
 0x25f   : > { %3395 = vrcp.f32 %v1866_v30 }
 0x260   : > { %v4484_v55 = vpop.xlane.xlu0 %1874 }
 0x262   : > { %v4481_v3 = vpop.xlane.xlu1 %1871 }
 0x264   : > { %v1863_v15 = vpop.xlane.xlu0 %1862 }
 0x266   : > { %v1860_v19 = vpop.xlane.xlu1 %1859 }
 0x267   : > { %3397 = vrcp.f32 %v1860_v19 }
 0x268   : > { %3399 = vrcp.f32 %v1869_v47 }
 0x269   : > { %3401 = vrcp.f32 %v1863_v15  ;;  %v3396_v45 = vpop.eup %3395 }
 0x26a   : > { %3403 = vrcp.f32 %v4455_v63 }
 0x26b   : > { %3405 = vrcp.f32 %v4457_v49 }
 0x26c   : > { %3407 = vrcp.f32 %v4459_v11 }
 0x26d   : > { %3409 = vrcp.f32 %v4461_v24 }
 0x26e   : > { %3411 = vrcp.f32 %v4464_v43 }
 0x26f   : > { %3413 = vrcp.f32 %v4471_v44 }
 0x270   : > { %3415 = vrcp.f32 %v4481_v3 }
 0x271   : > { %3417 = vrcp.f32 %v4484_v55 }
 0x279   : > { %v3184_v7 = vpop.f32.mrb[16].mxu0 }
 0x27a   : > { %v2098_v31 = vmul.f32 %v3372_v39, %v3184_v7  ;;  %v2014_v12 = vpop.f32.mrb[17].mxu0  ;;  %v3398_v39 = vpop.eup %3397 }
 0x27b   : > { %v2096_v33 = vmul.f32 %v3374_v20, %v2014_v12  ;;  %v3185_v52 = vpop.f32.mrb[18].mxu0  ;;  %v1893_v12 = vpop.xlane.xlu0 %1892 }
 0x27c   : > { %2106 = vst.msk [vmem:[%s4469_s19 + $0x10] sm:$0xff] %vm1058_vm0, %v2098_v31  ;;  %v2099_v29 = vmul.f32 %v3376_v41, %v3185_v52  ;;  %v2017_v42 = vpop.f32.mrb[19].mxu0  ;;  %v3400_v31 = vpop.eup %3399 }
 0x27d   : > { %2104 = vst.msk [vmem:[%s4469_s19] sm:$0xff] %vm1058_vm0, %v2096_v33  ;;  %v2097_v27 = vmul.f32 %v3378_v54, %v2017_v42  ;;  %v3402_v52 = vpop.eup %3401  ;;  %v1890_v54 = vpop.xlane.xlu1 %1889 }
 0x27e   : > { %2107 = vst.msk [vmem:[%s4469_s19 + $0x18] sm:$0xff] %vm1058_vm0, %v2099_v29  ;;  %3419 = vrcp.f32 %v1890_v54 }
 0x27f   : > { %2105 = vst.msk [vmem:[%s4469_s19 + $0x8] sm:$0xff] %vm1058_vm0, %v2097_v27  ;;  %v1905_v49 = vpop.xlane.xlu0 %1904  ;;  %3421 = vrcp.f32 %v1893_v12 }
 0x281   : > { %v3200_v46 = vpop.f32.mrb[20].mxu0  ;;  %v1902_v30 = vpop.xlane.xlu1 %1901 }
 0x282   : > { %v2176_v18 = vpop.f32.mrb[21].mxu0  ;;  %v2264_v59 = vmul.f32 %v3380_v10, %v3200_v46  ;;  %v3404_v46 = vpop.eup %3403 }
 0x283   : > { %v3201_v17 = vpop.f32.mrb[22].mxu0  ;;  %v2262_v5 = vmul.f32 %v3384_v36, %v2176_v18 }
 0x284   : > { %v2265_v28 = vmul.f32 %v3382_v38, %v3201_v17  ;;  %v2179_v6 = vpop.f32.mrb[23].mxu0  ;;  %2282 = vrot.lane.b32.xlu1 %v2264_v59, %s3447_s23  ;;  %v3406_v17 = vpop.eup %3405 }
 0x285   : > { %v2263_v9 = vmul.f32 %v3386_v53, %v2179_v6  ;;  %v3408_v43 = vpop.eup %3407  ;;  %v1884_v36 = vpop.xlane.xlu1 %1883 }
 0x286   : > { %2284 = vrot.lane.b32.xlu0 %v2265_v28, %s3447_s23  ;;  %v3410_v44 = vpop.eup %3409  ;;  %3423 = vrcp.f32 %v1884_v36 }
 0x288   : > { %2278 = vrot.lane.b32.xlu1 %v2262_v5, %s3447_s23 }
 0x289   : > { %v3216_v1 = vpop.f32.mrb[24].mxu0 }
 0x28a   : > { %v2463_v57 = vmul.f32 %v3388_v21, %v3216_v1  ;;  %v2375_v23 = vpop.f32.mrb[25].mxu0  ;;  %2280 = vrot.lane.b32.xlu0 %v2263_v9, %s3447_s23  ;;  %v1887_v9 = vpop.xlane.xlu0 %1886 }
 0x28b   : > { %v3217_v37 = vpop.f32.mrb[26].mxu0  ;;  %v2461_v48 = vmul.f32 %v3392_v56, %v2375_v23  ;;  %v3412_v1 = vpop.eup %3411  ;;  %3425 = vrcp.f32 %v1887_v9 }
 0x28c   : > { %v2464_v25 = vmul.f32 %v3390_v2, %v3217_v37  ;;  %v2378_v50 = vpop.f32.mrb[27].mxu0  ;;  %2481 = vrot.lane.b32.xlu1 %v2463_v57, %s3448_s20  ;;  %v3414_v55 = vpop.eup %3413 }
 0x28d   : > { %v2462_v22 = vmul.f32 %v3394_v60, %v2378_v50  ;;  %v1896_v2 = vpop.xlane.xlu1 %1895  ;;  %v3416_v15 = vpop.eup %3415 }
 0x28e   : > { %2483 = vrot.lane.b32.xlu0 %v2464_v25, %s3448_s20  ;;  %v1899_v25 = vpop.xlane.xlu0 %1898  ;;  %v3418_v56 = vpop.eup %3417  ;;  %3427 = vrcp.f32 %v1896_v2 }
 0x28f   : > { %3429 = vrcp.f32 %v1899_v25 }
 0x290   : > { %2477 = vrot.lane.b32.xlu1 %v2461_v48, %s3448_s20  ;;  %3431 = vrcp.f32 %v1902_v30 }
 0x291   : > { %3433 = vrcp.f32 %v1905_v49 }
 0x292   : > { %2479 = vrot.lane.b32.xlu0 %v2462_v22, %s3448_s20 }
 0x296   : > { %v3192_v58 = vpop.f32.mrb[16].mxu1 }
 0x297   : > { %v2102_v7 = vmul.f32 %v3396_v45, %v3192_v58  ;;  %v2081_v20 = vpop.f32.mrb[17].mxu1  ;;  %v3420_v45 = vpop.eup %3419 }
 0x298   : > { %v2100_v41 = vmul.f32 %v3398_v39, %v2081_v20  ;;  %v3193_v33 = vpop.f32.mrb[18].mxu1  ;;  %v3422_v20 = vpop.eup %3421 }
 0x299   : > { %2110 = vst.msk [vmem:[%s4469_s19 + $0x30] sm:$0xff] %vm1058_vm0, %v2102_v7  ;;  %v2103_v29 = vmul.f32 %v3400_v31, %v3193_v33  ;;  %v2084_v42 = vpop.f32.mrb[19].mxu1  ;;  %v3424_v12 = vpop.eup %3423 }
 0x29a   : > { %2108 = vst.msk [vmem:[%s4469_s19 + $0x20] sm:$0xff] %vm1058_vm0, %v2100_v41  ;;  %v2101_v63 = vmul.f32 %v3402_v52, %v2084_v42  ;;  %v3426_v33 = vpop.eup %3425 }
 0x29b   : > { %2111 = vst.msk [vmem:[%s4469_s19 + $0x38] sm:$0xff] %vm1058_vm0, %v2103_v29  ;;  %v3428_v54 = vpop.eup %3427 }
 0x29c   : > { %2109 = vst.msk [vmem:[%s4469_s19 + $0x28] sm:$0xff] %vm1058_vm0, %v2101_v63  ;;  %v3430_v42 = vpop.eup %3429 }
 0x29e   : > { %v3208_v27 = vpop.f32.mrb[20].mxu1  ;;  %v3232_v10 = vpop.f32.mrb[28].mxu0 }
 0x29f   : > { %v2247_v47 = vpop.f32.mrb[21].mxu1  ;;  %v2662_v18 = vmul.f32 %v3404_v46, %v3232_v10  ;;  %v2574_v38 = vpop.f32.mrb[29].mxu0  ;;  %v2268_v57 = vmul.f32 %v3412_v1, %v3208_v27 }
 0x2a0   : > { %v3209_v11 = vpop.f32.mrb[22].mxu1  ;;  %v3233_v24 = vpop.f32.mrb[30].mxu0  ;;  %v2660_v53 = vmul.f32 %v3408_v43, %v2574_v38  ;;  %v2266_v50 = vmul.f32 %v3416_v15, %v2247_v47 }
 0x2a1   : > { %v2250_v59 = vpop.f32.mrb[23].mxu1  ;;  %v2663_v28 = vmul.f32 %v3406_v17, %v3233_v24  ;;  %v2577_v6 = vpop.f32.mrb[31].mxu0  ;;  %2680 = vrot.lane.b32.xlu1 %v2662_v18, %s3449_s22  ;;  %v2269_v37 = vmul.f32 %v3414_v55, %v3209_v11 }
 0x2a2   : > { %v2661_v21 = vmul.f32 %v3410_v44, %v2577_v6  ;;  %v2267_v48 = vmul.f32 %v3418_v56, %v2250_v59  ;;  %v3432_v27 = vpop.eup %3431  ;;  %v846_v46 = vpop.permute.xlu1 %845 }
 0x2a3   : > { %2682 = vrot.lane.b32.xlu0 %v2663_v28, %s3449_s22  ;;  %v3434_v49 = vpop.eup %3433  ;;  %v851_v10 = vpop.permute.xlu0 %850 }
 0x2a5   : > { %2676 = vrot.lane.b32.xlu1 %v2660_v53, %s3449_s22 }
 0x2a6   : > { %v3224_v5 = vpop.f32.mrb[24].mxu1  ;;  %v856_v11 = vpop.permute.xlu1 %855 }
 0x2a7   : > { %v2446_v3 = vpop.f32.mrb[25].mxu1  ;;  %2678 = vrot.lane.b32.xlu0 %v2661_v21, %s3449_s22  ;;  %v2467_v39 = vmul.f32 %v3420_v45, %v3224_v5  ;;  %v861_v18 = vpop.permute.xlu0 %860 }
 0x2a8   : > { %v3225_v19 = vpop.f32.mrb[26].mxu1  ;;  %v2465_v41 = vmul.f32 %v3424_v12, %v2446_v3  ;;  %v4656_v12 = vld [vmem:[#allocation4_spill] sm:$0xff] }
 0x2a9   : > { %v2449_v23 = vpop.f32.mrb[27].mxu1  ;;  %2290 = vrot.lane.b32.xlu1 %v2268_v57, %s3447_s23  ;;  %v2468_v31 = vmul.f32 %v3422_v20, %v3225_v19  ;;  %v2880_v57 = vld [vmem:[%s4626_s4 + $0x8] ss:$0 sm:$0xff] }
 0x2aa   : > { %v2466_v52 = vmul.f32 %v3426_v33, %v2449_v23  ;;  %v869_v2 = vmul.f32 %v2880_v57, %v846_v46 }
 0x2ab   : > { %2292 = vrot.lane.b32.xlu0 %v2269_v37, %s3447_s23  ;;  %v870_v37 = vmul.f32 %v2880_v57, %v851_v10 }
 0x2ac   : > { %v877_v56 = vmul.f32 %v869_v2, %v4244_v8 }
 0x2ad   : > { %2286 = vrot.lane.b32.xlu1 %v2266_v50, %s3447_s23  ;;  %v873_v50 = vmul.f32 %v869_v2, %v4237_v35 }
 0x2ae   : > { %v885_v35 = vadd.f32 %v877_v56, %v4435_v34 }
 0x2af   : > { %v3240_v60 = vpop.f32.mrb[28].mxu1  ;;  %2288 = vrot.lane.b32.xlu0 %v2267_v48, %s3447_s23  ;;  %v874_v48 = vmul.f32 %v870_v37, %v4219_v16  ;;  %v2881_v16 = vld [vmem:[%s4627_s5] ss:$0 sm:$0xff] }
 0x2b0   : > { %v2645_v22 = vpop.f32.mrb[29].mxu1  ;;  %v2666_v30 = vmul.f32 %v3432_v27, %v3240_v60  ;;  %v871_v60 = vmul.f32 %v2880_v57, %v856_v11 }
 0x2b1   : > { %v3241_v58 = vpop.f32.mrb[30].mxu1  ;;  %2489 = vrot.lane.b32.xlu1 %v2467_v39, %s3448_s20  ;;  %v2664_v29 = vmul.f32 %v3428_v54, %v2645_v22  ;;  %v878_v22 = vmul.f32 %v870_v37, %v4233_v51  ;;  %v882_v51 = vadd.f32 %v874_v48, %v4441_v62 }
 0x2b2   : > { %v2648_v7 = vpop.f32.mrb[31].mxu1  ;;  %v2667_v47 = vmul.f32 %v3434_v49, %v3241_v58  ;;  %v872_v58 = vmul.f32 %v2880_v57, %v861_v18  ;;  %v875_v8 = vmul.f32 %v871_v60, %v4309_v26  ;;  %v879_v20 = vmul.f32 %v871_v60, %v4317_v32 }
 0x2b3   : > { %2491 = vrot.lane.b32.xlu0 %v2468_v31, %s3448_s20  ;;  %v2665_v63 = vmul.f32 %v3430_v42, %v2648_v7  ;;  %v881_v7 = vadd.f32 %v873_v50, %v4433_v14  ;;  %v886_v31 = vadd.f32 %v878_v22, %v4443_v13  ;;  %v897_v62 = vadd.f32 %v2881_v16, %v882_v51 }
 0x2b4   : > { %v876_v34 = vmul.f32 %v872_v58, %v4656_v12  ;;  %v883_v54 = vadd.f32 %v875_v8, %v4445_v0 }
 0x2b5   : > { %2485 = vrot.lane.b32.xlu1 %v2465_v41, %s3448_s20  ;;  %v4657_v41 = vld [vmem:[#allocation5_spill] sm:$0xff]  ;;  %v896_v32 = vadd.f32 %v2881_v16, %v881_v7  ;;  %v901_v13 = vadd.f32 %v2881_v16, %v886_v31 }
 0x2b6   : > { %v880_v33 = vmul.f32 %v872_v58, %v4657_v41  ;;  %v884_v27 = vadd.f32 %v876_v34, %v4451_v40  ;;  %v898_v46 = vadd.f32 %v2881_v16, %v883_v54 }
 0x2b7   : > { %2487 = vrot.lane.b32.xlu0 %v2466_v52, %s3448_s20  ;;  %v900_v52 = vadd.f32 %v2881_v16, %v885_v35 }
 0x2b9   : > { %2684 = vrot.lane.b32.xlu1 %v2664_v29, %s3449_s22  ;;  %v887_v29 = vadd.f32 %v879_v20, %v4447_v4 }
 0x2bb   : > { %2686 = vrot.lane.b32.xlu0 %v2665_v63, %s3449_s22  ;;  %v902_v10 = vadd.f32 %v2881_v16, %v887_v29 }
 0x2bd   : > { %2688 = vrot.lane.b32.xlu1 %v2666_v30, %s3449_s22  ;;  %v888_v30 = vadd.f32 %v880_v33, %v4453_v61 }
 0x2bf   : > { %2690 = vrot.lane.b32.xlu0 %v2667_v47, %s3449_s22 }
 0x2f6   : > { %v2283_v38 = vpop.permute.xlu1 %2282 }
 0x2f7   : > { %2305 = vst.msk [vmem:[%s4469_s19 + $0x10] sm:$0xff] %vm2302_vm7, %v2283_v38  ;;  %v899_v38 = vadd.f32 %v2881_v16, %v884_v27 }
 0x2f8   : > { %v2285_v59 = vpop.permute.xlu0 %2284 }
 0x2f9   : > { %2306 = vst.msk [vmem:[%s4469_s19 + $0x18] sm:$0xff] %vm2302_vm7, %v2285_v59  ;;  %v903_v59 = vadd.f32 %v2881_v16, %v888_v30 }
 0x2fa   : > { %v2279_v17 = vpop.permute.xlu1 %2278 }
 0x2fb   : > { %2303 = vst.msk [vmem:[%s4469_s19] sm:$0xff] %vm2302_vm7, %v2279_v17 }
 0x2fc   : > { %v2281_v24 = vpop.permute.xlu0 %2280 }
 0x2fd   : > { %2304 = vst.msk [vmem:[%s4469_s19 + $0x8] sm:$0xff] %vm2302_vm7, %v2281_v24 }
 0x2fe   : > { %v2482_v28 = vpop.permute.xlu1 %2481 }
 0x2ff   : > { %2504 = vst.msk [vmem:[%s4469_s19 + $0x10] sm:$0xff] %vm2501_vm8, %v2482_v28 }
 0x300   : > { %v2484_v6 = vpop.permute.xlu0 %2483 }
 0x301   : > { %2505 = vst.msk [vmem:[%s4469_s19 + $0x18] sm:$0xff] %vm2501_vm8, %v2484_v6 }
 0x302   : > { %v2478_v43 = vpop.permute.xlu1 %2477 }
 0x303   : > { %2502 = vst.msk [vmem:[%s4469_s19] sm:$0xff] %vm2501_vm8, %v2478_v43 }
 0x304   : > { %v2480_v36 = vpop.permute.xlu0 %2479 }
 0x305   : > { %2503 = vst.msk [vmem:[%s4469_s19 + $0x8] sm:$0xff] %vm2501_vm8, %v2480_v36 }
 0x313   : > { %v2681_v53 = vpop.permute.xlu1 %2680 }
 0x314   : > { %2703 = vst.msk [vmem:[%s4469_s19 + $0x10] sm:$0xff] %vm2700_vm9, %v2681_v53 }
 0x315   : > { %v2683_v44 = vpop.permute.xlu0 %2682 }
 0x316   : > { %2704 = vst.msk [vmem:[%s4469_s19 + $0x18] sm:$0xff] %vm2700_vm9, %v2683_v44 }
 0x317   : > { %v2677_v5 = vpop.permute.xlu1 %2676 }
 0x318   : > { %2701 = vst.msk [vmem:[%s4469_s19] sm:$0xff] %vm2700_vm9, %v2677_v5 }
 0x319   : > { %v2679_v9 = vpop.permute.xlu0 %2678 }
 0x31a   : > { %2702 = vst.msk [vmem:[%s4469_s19 + $0x8] sm:$0xff] %vm2700_vm9, %v2679_v9 }
 0x31b   : > { %v2291_v21 = vpop.permute.xlu1 %2290  ;;  %v2711_v40 = vld [vmem:[%s4469_s19 + $0x10] sm:$0xff] }
 0x31c   : > { %2309 = vst.msk [vmem:[%s4469_s19 + $0x30] sm:$0xff] %vm2302_vm7, %v2291_v21  ;;  %v2719_v17 = vadd.f32 %v2711_v40, %v898_v46 }
 0x31d   : > { %v2293_v3 = vpop.permute.xlu0 %2292  ;;  %v2712_v28 = vld [vmem:[%s4469_s19 + $0x18] sm:$0xff] }
 0x31e   : > { %2310 = vst.msk [vmem:[%s4469_s19 + $0x38] sm:$0xff] %vm2302_vm7, %v2293_v3  ;;  %v2720_v43 = vadd.f32 %v2712_v28, %v899_v38 }
 0x31f   : > { %v2287_v1 = vpop.permute.xlu1 %2286  ;;  %v2709_v42 = vld [vmem:[%s4469_s19] sm:$0xff]  ;;  %2727 = vst.msk [vmem:[%s4469_s19 + $0x10] sm:$0xff] %vm1617_vm1, %v2719_v17 }
 0x320   : > { %2307 = vst.msk [vmem:[%s4469_s19 + $0x20] sm:$0xff] %vm2302_vm7, %v2287_v1  ;;  %v2717_v49 = vadd.f32 %v2709_v42, %v896_v32 }
 0x321   : > { %v2289_v19 = vpop.permute.xlu0 %2288  ;;  %v2710_v0 = vld [vmem:[%s4469_s19 + $0x8] sm:$0xff]  ;;  %2728 = vst.msk [vmem:[%s4469_s19 + $0x18] sm:$0xff] %vm1617_vm1, %v2720_v43 }
 0x322   : > { %2308 = vst.msk [vmem:[%s4469_s19 + $0x28] sm:$0xff] %vm2302_vm7, %v2289_v19  ;;  %v2718_v11 = vadd.f32 %v2710_v0, %v897_v62 }
 0x323   : > { %v2490_v23 = vpop.permute.xlu1 %2489  ;;  %2725 = vst.msk [vmem:[%s4469_s19] sm:$0xff] %vm1617_vm1, %v2717_v49 }
 0x324   : > { %2508 = vst.msk [vmem:[%s4469_s19 + $0x30] sm:$0xff] %vm2501_vm8, %v2490_v23 }
 0x325   : > { %v2492_v55 = vpop.permute.xlu0 %2491  ;;  %2726 = vst.msk [vmem:[%s4469_s19 + $0x8] sm:$0xff] %vm1617_vm1, %v2718_v11 }
 0x326   : > { %2509 = vst.msk [vmem:[%s4469_s19 + $0x38] sm:$0xff] %vm2501_vm8, %v2492_v55 }
 0x327   : > { %v2486_v15 = vpop.permute.xlu1 %2485 }
 0x328   : > { %2506 = vst.msk [vmem:[%s4469_s19 + $0x20] sm:$0xff] %vm2501_vm8, %v2486_v15 }
 0x329   : > { %v2488_v25 = vpop.permute.xlu0 %2487 }
 0x32a   : > { %2507 = vst.msk [vmem:[%s4469_s19 + $0x28] sm:$0xff] %vm2501_vm8, %v2488_v25 }
 0x32b   : > { %v2685_v45 = vpop.permute.xlu1 %2684 }
 0x32c   : > { %2705 = vst.msk [vmem:[%s4469_s19 + $0x20] sm:$0xff] %vm2700_vm9, %v2685_v45 }
 0x32d   : > { %v2687_v39 = vpop.permute.xlu0 %2686 }
 0x32e   : > { %2706 = vst.msk [vmem:[%s4469_s19 + $0x28] sm:$0xff] %vm2700_vm9, %v2687_v39 }
 0x32f   : > { %v2689_v14 = vpop.permute.xlu1 %2688 }
 0x330   : > { %2707 = vst.msk [vmem:[%s4469_s19 + $0x30] sm:$0xff] %vm2700_vm9, %v2689_v14 }
 0x331   : > { %v2691_v26 = vpop.permute.xlu0 %2690 }
 0x332   : > { %2708 = vst.msk [vmem:[%s4469_s19 + $0x38] sm:$0xff] %vm2700_vm9, %v2691_v26 }
 0x333   : > { %v2713_v63 = vld [vmem:[%s4469_s19 + $0x20] sm:$0xff] }
 0x334   : > { %v2721_v47 = vadd.f32 %v2713_v63, %v900_v52 }
 0x335   : > { %v2714_v4 = vld [vmem:[%s4469_s19 + $0x28] sm:$0xff] }
 0x336   : > { %v2722_v18 = vadd.f32 %v2714_v4, %v901_v13  ;;  %2729 = vst.msk [vmem:[%s4469_s19 + $0x20] sm:$0xff] %vm1617_vm1, %v2721_v47 }
 0x337   : > { %v2715_v61 = vld [vmem:[%s4469_s19 + $0x30] sm:$0xff] }
 0x338   : > { %v2723_v24 = vadd.f32 %v2715_v61, %v902_v10  ;;  %2730 = vst.msk [vmem:[%s4469_s19 + $0x28] sm:$0xff] %vm1617_vm1, %v2722_v18 }
 0x339   : > { %v2716_v6 = vld [vmem:[%s4469_s19 + $0x38] sm:$0xff] }
 0x33a   : > { %v2724_v36 = vadd.f32 %v2716_v6, %v903_v59  ;;  %2731 = vst.msk [vmem:[%s4469_s19 + $0x30] sm:$0xff] %vm1617_vm1, %v2723_v24 }
 0x33c   : > { %2732 = vst.msk [vmem:[%s4469_s19 + $0x38] sm:$0xff] %vm1617_vm1, %v2724_v36 }
 0x33d PF: > { %s16_s21 = sadd.s32 1, %s3441_s21  }
 0x33e   : > { %p13_p4 = scmp.ge.s32.totalorder %s16_s21, 4  }
 0x340   :  { %15 = sbr.rel (!%p13_p4) target bundleno = 1 (0x1), region = 96 }

</bundles_post_ra>
